<compile_context>
chip_gen: v5e
topology: v5e:2x2
jax: 0.10.0
libtpu: 0.0.40
codegen_flags: <defaults>
</compile_context>

<pallas_src>
import functools

import jax
import jax.numpy as jnp
from jax import lax
from jax.experimental import pallas as pl
from jax.experimental.pallas import tpu as pltpu


def _round_up(x, m):
    return ((x + m - 1) // m) * m


# ---------------------------------------------------------------------------
# Kernel 1: fused conv (im2col matmul) + 2x2 max-pool (phase max) + bias + ReLU
#   p_ref: (4, K, TM) bf16   w_ref: (Cout, K) bf16   b_ref: (Cout, 1) f32
#   o_ref: (Cout, TM) bf16
# The lane tile TM is processed in `chunk`-wide pieces (unrolled fori_loop) so the
# live f32 accumulator stays small (<= ~16 vregs) and never spills.
# ---------------------------------------------------------------------------
def conv_relu_pool_kernel(p_ref, w_ref, b_ref, o_ref, *, chunk, nchunks):
    w = w_ref[...]          # (Cout, K) bf16, VMEM-resident across grid steps
    b = b_ref[...]          # (Cout, 1) f32

    def body(ci, carry):
        start = pl.multiple_of(ci * chunk, chunk)
        sl = pl.ds(start, chunk)
        acc = jnp.dot(w, p_ref[0, :, sl], preferred_element_type=jnp.float32)
        for ph in range(1, 4):
            acc = jnp.maximum(
                acc, jnp.dot(w, p_ref[ph, :, sl], preferred_element_type=jnp.float32))
        # ReLU commutes with max, so relu(pool(conv)) == pool(relu(conv));
        # bias is phase-constant so it can be added after the phase max.
        o_ref[:, sl] = jnp.maximum(acc + b, 0.0).astype(o_ref.dtype)
        return carry

    lax.fori_loop(0, nchunks, body, None, unroll=True)


def conv_relu_pool(p, w_t, b_col, *, tm=2048, chunk=256):
    """p: (4, K, M) bf16 im2col phases, w_t: (Cout, K) bf16, b_col: (Cout, 1) f32
    -> (Cout, M) bf16."""
    nph, k, m = p.shape
    cout = w_t.shape[0]

    # Lane axis padded to a multiple of 128 -> lane-dense (unmasked) loads/stores.
    m128 = _round_up(m, 128)
    tm_eff = min(tm, m128)
    # Keep >= 2 grid steps when possible so v7x's second TensorCore gets work.
    if m128 > 128 and tm_eff >= m128:
        tm_eff = _round_up(m128 // 2, 128)
    m_pad = _round_up(m, tm_eff)
    if m_pad != m:
        p = jnp.pad(p, ((0, 0), (0, 0), (0, m_pad - m)))

    chunk_eff = min(chunk, tm_eff)
    if tm_eff % chunk_eff != 0:
        chunk_eff = 128
    nchunks = tm_eff // chunk_eff

    kernel = functools.partial(conv_relu_pool_kernel, chunk=chunk_eff, nchunks=nchunks)
    out = pl.pallas_call(
        kernel,
        out_shape=jax.ShapeDtypeStruct((cout, m_pad), jnp.bfloat16),
        grid_spec=pltpu.PrefetchScalarGridSpec(
            num_scalar_prefetch=0,
            grid=(m_pad // tm_eff,),
            in_specs=[
                pl.BlockSpec((nph, k, tm_eff), lambda i: (0, 0, i)),
                pl.BlockSpec((cout, k), lambda i: (0, 0)),   # VMEM-resident
                pl.BlockSpec((cout, 1), lambda i: (0, 0)),   # VMEM-resident
            ],
            out_specs=pl.BlockSpec((cout, tm_eff), lambda i: (0, i)),
        ),
        compiler_params=pltpu.CompilerParams(
            dimension_semantics=("parallel",),
            vmem_limit_bytes=48 * 1024 * 1024,
        ),
    )(p, w_t, b_col)
    return out[:, :m]


# ---------------------------------------------------------------------------
# Kernel 2: fused fc1 + ReLU + dropout(0.5) + fc2 + dropout(0.5)
#   x_ref: (TN, Din) bf16   w1: (Din, 128) bf16   b1: (1, 128) f32
#   w2: (128, 128p) bf16 (pre-scaled x4)  b2: (1, 128p) f32 (pre-scaled x2)
#   m1/m2: int8 keep masks (0/1) -- inverted-dropout scales are folded into w2/b2.
# ---------------------------------------------------------------------------
def fc_dropout_kernel(x_ref, w1_ref, b1_ref, w2_ref, b2_ref, m1_ref, m2_ref, o_ref):
    h = jnp.dot(x_ref[...], w1_ref[...], preferred_element_type=jnp.float32)
    h = jnp.maximum(h + b1_ref[...], 0.0) * m1_ref[...].astype(jnp.float32)
    h = h.astype(w2_ref.dtype)
    o = jnp.dot(h, w2_ref[...], preferred_element_type=jnp.float32) + b2_ref[...]
    o_ref[...] = (o * m2_ref[...].astype(jnp.float32)).astype(o_ref.dtype)


def fc_head(feat, w1, b1_row, w2_eff, b2_row_eff, dropout_key, *, tn=512):
    n, d_in = feat.shape
    d_h = w1.shape[1]
    d_op = w2_eff.shape[1]

    gran = 32                      # row granularity keeps the int8 mask blocks tile-aligned
    n_g = _round_up(n, gran)
    tn_eff = min(tn, n_g)
    if n_g > gran and tn_eff >= n_g:
        tn_eff = _round_up(n_g // 2, gran)     # >= 2 grid steps for the v7x megacore
    n_pad = _round_up(n, tn_eff)
    if n_pad != n:
        feat = jnp.pad(feat, ((0, n_pad - n), (0, 0)))

    # Training-mode dropout keep-masks (p = 0.5).  0/1 int8; the x2 scales live in w2/b2.
    # TODO(synk): switch to in-kernel pltpu.prng_seed/prng_random_bits when supported.
    k1, k2 = jax.random.split(dropout_key)
    mask1 = jax.random.bernoulli(k1, 0.5, (n_pad, d_h)).astype(jnp.int8)
    mask2 = jax.random.bernoulli(k2, 0.5, (n_pad, d_op)).astype(jnp.int8)

    out = pl.pallas_call(
        fc_dropout_kernel,
        out_shape=jax.ShapeDtypeStruct((n_pad, d_op), jnp.float32),
        grid_spec=pltpu.PrefetchScalarGridSpec(
            num_scalar_prefetch=0,
            grid=(n_pad // tn_eff,),
            in_specs=[
                pl.BlockSpec((tn_eff, d_in), lambda i: (i, 0)),
                pl.BlockSpec((d_in, d_h), lambda i: (0, 0)),   # VMEM-resident
                pl.BlockSpec((1, d_h), lambda i: (0, 0)),
                pl.BlockSpec((d_h, d_op), lambda i: (0, 0)),   # VMEM-resident
                pl.BlockSpec((1, d_op), lambda i: (0, 0)),
                pl.BlockSpec((tn_eff, d_h), lambda i: (i, 0)),
                pl.BlockSpec((tn_eff, d_op), lambda i: (i, 0)),
            ],
            out_specs=pl.BlockSpec((tn_eff, d_op), lambda i: (i, 0)),
        ),
        compiler_params=pltpu.CompilerParams(
            dimension_semantics=("parallel",),
            vmem_limit_bytes=48 * 1024 * 1024,
        ),
    )(feat, w1, b1_row, w2_eff, b2_row_eff, mask1, mask2)
    return out[:n]


# ---------------------------------------------------------------------------
# Host-side glue: transposed im2col with the 2x2 pooling phase as leading axis,
# consuming channel-major (C, N, H, W) activations directly (no NHWC transpose).
#   (C,N,H,W) -> (4, 9*C, N*(H//2)*(W//2))  for a 3x3/pad=1 conv followed by pool2.
#   K ordered (kh, kw, c); M ordered (n, h', w').
# ---------------------------------------------------------------------------
def im2col_pool_phases_cm(x_cnhw):
    c, n, h, w = x_cnhw.shape
    xp = jnp.pad(x_cnhw, ((0, 0), (0, 0), (1, 1), (1, 1)))
    ho, wo = h // 2, w // 2
    phases = []
    for a in range(2):
        for b in range(2):
            taps = []
            for kh in range(3):
                for kw in range(3):
                    taps.append(
                        xp[:, :, a + kh:a + kh + 2 * ho:2, b + kw:b + kw + 2 * wo:2])
            t = jnp.stack(taps, axis=0)              # (9, C, N, Ho, Wo)
            phases.append(t.reshape(9 * c, n * ho * wo))
    return jnp.stack(phases, axis=0)                 # (4, 9C, M)


# ---------------------------------------------------------------------------
# Parameter init (deterministic, PyTorch-style uniform fan-in scaling)
# ---------------------------------------------------------------------------
def init_params(key, in_h=16, in_w=16):
    ks = jax.random.split(key, 8)

    def uni(k, shape, fan_in):
        bound = 1.0 / jnp.sqrt(jnp.float32(fan_in))
        return jax.random.uniform(k, shape, jnp.float32, -bound, bound)

    flat_dim = (in_h // 4) * (in_w // 4) * 64   # what LazyLinear would infer
    return {
        "w_conv1": uni(ks[0], (32, 1, 3, 3), 1 * 9),
        "b_conv1": uni(ks[1], (32,), 1 * 9),
        "w_conv2": uni(ks[2], (64, 32, 3, 3), 32 * 9),
        "b_conv2": uni(ks[3], (64,), 32 * 9),
        "w_fc1":   uni(ks[4], (flat_dim, 128), flat_dim),
        "b_fc1":   uni(ks[5], (128,), flat_dim),
        "w_fc2":   uni(ks[6], (128, 10), 128),
        "b_fc2":   uni(ks[7], (10,), 128),
    }


# ---------------------------------------------------------------------------
# Forward pass (mirrors DropoutCNN.forward, training-mode dropout)
# ---------------------------------------------------------------------------
def dropout_cnn_forward(x_nchw, params, dropout_key):
    n, cin, h, w = x_nchw.shape
    cdt = jnp.bfloat16   # MXU operand dtype (f32 accumulation inside the kernels)

    # NCHW -> channel-major (Cin, N, H, W); with Cin=1 this is effectively a reshape.
    x = jnp.transpose(x_nchw, (1, 0, 2, 3)).astype(cdt)

    # conv1 (1->32, 3x3, pad 1) + ReLU + maxpool(2)
    p1 = im2col_pool_phases_cm(x)                                   # (4, 9, N*64) bf16
    w1t = jnp.transpose(params["w_conv1"], (0, 2, 3, 1)).reshape(32, 9 * cin).astype(cdt)
    y1 = conv_relu_pool(p1, w1t, params["b_conv1"].reshape(32, 1),
                        tm=8192, chunk=512)                         # (32, N*64) bf16
    h1, w1_ = h // 2, w // 2
    y1 = y1.reshape(32, n, h1, w1_)                                 # pure reshape

    # conv2 (32->64, 3x3, pad 1) + ReLU + maxpool(2)
    p2 = im2col_pool_phases_cm(y1)                                  # (4, 288, N*16) bf16
    w2t = jnp.transpose(params["w_conv2"], (0, 2, 3, 1)).reshape(64, 9 * 32).astype(cdt)
    y2 = conv_relu_pool(p2, w2t, params["b_conv2"].reshape(64, 1),
                        tm=2048, chunk=256)                         # (64, N*16) bf16
    h2, w2_ = h // 4, w // 4

    # Flatten exactly like PyTorch x.view(N, -1) on an NCHW tensor (feature = c*16 + s).
    feat = jnp.transpose(y2.reshape(64, n, h2 * w2_), (1, 0, 2)).reshape(n, -1)

    # fc head.  Inverted-dropout (p=0.5) scales folded into fc2: out =
    #   ((relu(fc1)*m1*2) @ w2 + b2) * m2 * 2  ==  ((relu(fc1)*m1) @ (4*w2) + 2*b2) * m2
    d_out = params["w_fc2"].shape[1]
    d_out_pad = _round_up(d_out, 128)          # lane-dense fc2 output (10 -> 128)
    w_fc2_eff = jnp.pad(params["w_fc2"] * 4.0,
                        ((0, 0), (0, d_out_pad - d_out))).astype(cdt)
    b_fc2_eff = jnp.pad(params["b_fc2"] * 2.0, ((0, d_out_pad - d_out),)).reshape(1, -1)

    out = fc_head(
        feat,
        params["w_fc1"].astype(cdt), params["b_fc1"].reshape(1, -1),
        w_fc2_eff, b_fc2_eff,
        dropout_key,
        tn=512,
    )
    return out[:, :d_out]


if __name__ == "__main__":
    key = jax.random.PRNGKey(0)
    pkey, xkey, dkey = jax.random.split(key, 3)

    params = init_params(pkey, in_h=16, in_w=16)
    x = jax.random.normal(xkey, (2, 1, 16, 16), dtype=jnp.float32)  # small MNIST-like

    fwd = jax.jit(dropout_cnn_forward)
    out = jax.block_until_ready(fwd(x, params, dkey))

    assert out.shape == (2, 10), out.shape
    assert out.dtype == jnp.float32, out.dtype
    print("KERNEL_OK")
</pallas_src>

<mosaic_0001>
module attributes {stable_mosaic.version = 11 : i64} {
  func.func @conv_relu_pool_kernel(%arg0: i32, %arg1: memref<4x9x128xbf16, #tpu.memory_space<vmem>>, %arg2: memref<32x9xbf16, #tpu.memory_space<vmem>>, %arg3: memref<32x1xf32, #tpu.memory_space<vmem>>, %arg4: memref<32x128xbf16, #tpu.memory_space<vmem>>) attributes {dimension_semantics = [#tpu.dimension_semantics<parallel>], iteration_bounds = array<i64: 1>, scalar_prefetch = 0 : i64, scratch_operands = 0 : i64, tpu.core_type = #tpu.core_type<tc>, window_params = [{transform_indices = @transform_0, window_bounds = array<i64: 4, 9, 128>}, {pipeline_mode = #tpu.pipeline_mode<synchronous>, transform_indices = @transform_1, window_bounds = array<i64: 32, 9>}, {pipeline_mode = #tpu.pipeline_mode<synchronous>, transform_indices = @transform_2, window_bounds = array<i64: 32, 1>}, {transform_indices = @transform_3, window_bounds = array<i64: 32, 128>}]} {
    %c0 = arith.constant 0 : index
    %c0_0 = arith.constant 0 : index
    %0 = vector.load %arg2[%c0, %c0_0] : memref<32x9xbf16, #tpu.memory_space<vmem>>, vector<32x9xbf16>
    %c0_1 = arith.constant 0 : index
    %c0_2 = arith.constant 0 : index
    %1 = vector.load %arg3[%c0_1, %c0_2] : memref<32x1xf32, #tpu.memory_space<vmem>>, vector<32x1xf32>
    %c0_i32 = arith.constant 0 : i32
    %c128_i32 = arith.constant 128 : i32
    %2 = arith.muli %c0_i32, %c128_i32 : i32
    %3 = tpu.assume_multiple %2, 128 : i32
    %c0_3 = arith.constant 0 : index
    %c0_4 = arith.constant 0 : index
    %4 = arith.index_cast %3 : i32 to index
    %5 = vector.load %arg1[%c0_3, %c0_4, %4] : memref<4x9x128xbf16, #tpu.memory_space<vmem>>, vector<1x9x128xbf16>
    %6 = vector.shape_cast %5 : vector<1x9x128xbf16> to vector<9x128xbf16>
    %cst = arith.constant dense<0.000000e+00> : vector<32x128xf32>
    %7 = tpu.matmul %0, %6, %cst {dimension_numbers = #tpu.dot_dimension_numbers<[1], [0], [0], [1], [0, 0, 1, 1], [], []>} : vector<32x9xbf16>, vector<9x128xbf16>, vector<32x128xf32> -> vector<32x128xf32>
    %c1 = arith.constant 1 : index
    %c0_5 = arith.constant 0 : index
    %8 = arith.index_cast %3 : i32 to index
    %9 = vector.load %arg1[%c1, %c0_5, %8] : memref<4x9x128xbf16, #tpu.memory_space<vmem>>, vector<1x9x128xbf16>
    %10 = vector.shape_cast %9 : vector<1x9x128xbf16> to vector<9x128xbf16>
    %cst_6 = arith.constant dense<0.000000e+00> : vector<32x128xf32>
    %11 = tpu.matmul %0, %10, %cst_6 {dimension_numbers = #tpu.dot_dimension_numbers<[1], [0], [0], [1], [0, 0, 1, 1], [], []>} : vector<32x9xbf16>, vector<9x128xbf16>, vector<32x128xf32> -> vector<32x128xf32>
    %12 = arith.maximumf %7, %11 : vector<32x128xf32>
    %c2 = arith.constant 2 : index
    %c0_7 = arith.constant 0 : index
    %13 = arith.index_cast %3 : i32 to index
    %14 = vector.load %arg1[%c2, %c0_7, %13] : memref<4x9x128xbf16, #tpu.memory_space<vmem>>, vector<1x9x128xbf16>
    %15 = vector.shape_cast %14 : vector<1x9x128xbf16> to vector<9x128xbf16>
    %cst_8 = arith.constant dense<0.000000e+00> : vector<32x128xf32>
    %16 = tpu.matmul %0, %15, %cst_8 {dimension_numbers = #tpu.dot_dimension_numbers<[1], [0], [0], [1], [0, 0, 1, 1], [], []>} : vector<32x9xbf16>, vector<9x128xbf16>, vector<32x128xf32> -> vector<32x128xf32>
    %17 = arith.maximumf %12, %16 : vector<32x128xf32>
    %c3 = arith.constant 3 : index
    %c0_9 = arith.constant 0 : index
    %18 = arith.index_cast %3 : i32 to index
    %19 = vector.load %arg1[%c3, %c0_9, %18] : memref<4x9x128xbf16, #tpu.memory_space<vmem>>, vector<1x9x128xbf16>
    %20 = vector.shape_cast %19 : vector<1x9x128xbf16> to vector<9x128xbf16>
    %cst_10 = arith.constant dense<0.000000e+00> : vector<32x128xf32>
    %21 = tpu.matmul %0, %20, %cst_10 {dimension_numbers = #tpu.dot_dimension_numbers<[1], [0], [0], [1], [0, 0, 1, 1], [], []>} : vector<32x9xbf16>, vector<9x128xbf16>, vector<32x128xf32> -> vector<32x128xf32>
    %22 = arith.maximumf %17, %21 : vector<32x128xf32>
    %23 = vector.broadcast %1 : vector<32x1xf32> to vector<32x128xf32>
    %24 = arith.addf %22, %23 : vector<32x128xf32>
    %cst_11 = arith.constant 0.000000e+00 : f32
    %25 = vector.broadcast %cst_11 : f32 to vector<32x128xf32>
    %26 = arith.maximumf %24, %25 : vector<32x128xf32>
    %27 = arith.truncf %26 : vector<32x128xf32> to vector<32x128xbf16>
    %c0_12 = arith.constant 0 : index
    %28 = arith.index_cast %3 : i32 to index
    %29 = vector.load %arg4[%c0_12, %28] : memref<32x128xbf16, #tpu.memory_space<vmem>>, vector<32x128xbf16>
    tpu.vector_store %arg4[%c0_12, %28], %27 {strides = array<i32>} : memref<32x128xbf16, #tpu.memory_space<vmem>>, vector<32x128xbf16>,
    %c1_i32 = arith.constant 1 : i32
    return
  }
  func.func @transform_0(%arg0: i32) -> (i32, i32, i32) {
    %c0_i32 = arith.constant 0 : i32
    %c0_i32_0 = arith.constant 0 : i32
    %c0_i32_1 = arith.constant 0 : i32
    return %c0_i32, %c0_i32_0, %arg0 : i32, i32, i32
  }
  func.func @transform_1(%arg0: i32) -> (i32, i32) {
    %c0_i32 = arith.constant 0 : i32
    %c0_i32_0 = arith.constant 0 : i32
    %c0_i32_1 = arith.constant 0 : i32
    return %c0_i32, %c0_i32_0 : i32, i32
  }
  func.func @transform_2(%arg0: i32) -> (i32, i32) {
    %c0_i32 = arith.constant 0 : i32
    %c0_i32_0 = arith.constant 0 : i32
    %c0_i32_1 = arith.constant 0 : i32
    return %c0_i32, %c0_i32_0 : i32, i32
  }
  func.func @transform_3(%arg0: i32) -> (i32, i32) {
    %c0_i32 = arith.constant 0 : i32
    %c0_i32_0 = arith.constant 0 : i32
    return %c0_i32, %arg0 : i32, i32
  }
}

module attributes {stable_mosaic.version = 11 : i64} {
  func.func @conv_relu_pool_kernel(%arg0: i32, %arg1: memref<4x288x128xbf16, #tpu.memory_space<vmem>>, %arg2: memref<64x288xbf16, #tpu.memory_space<vmem>>, %arg3: memref<64x1xf32, #tpu.memory_space<vmem>>, %arg4: memref<64x128xbf16, #tpu.memory_space<vmem>>) attributes {dimension_semantics = [#tpu.dimension_semantics<parallel>], iteration_bounds = array<i64: 1>, scalar_prefetch = 0 : i64, scratch_operands = 0 : i64, tpu.core_type = #tpu.core_type<tc>, window_params = [{transform_indices = @transform_0, window_bounds = array<i64: 4, 288, 128>}, {pipeline_mode = #tpu.pipeline_mode<synchronous>, transform_indices = @transform_1, window_bounds = array<i64: 64, 288>}, {pipeline_mode = #tpu.pipeline_mode<synchronous>, transform_indices = @transform_2, window_bounds = array<i64: 64, 1>}, {transform_indices = @transform_3, window_bounds = array<i64: 64, 128>}]} {
    %c0 = arith.constant 0 : index
    %c0_0 = arith.constant 0 : index
    %0 = vector.load %arg2[%c0, %c0_0] : memref<64x288xbf16, #tpu.memory_space<vmem>>, vector<64x288xbf16>
    %c0_1 = arith.constant 0 : index
    %c0_2 = arith.constant 0 : index
    %1 = vector.load %arg3[%c0_1, %c0_2] : memref<64x1xf32, #tpu.memory_space<vmem>>, vector<64x1xf32>
    %c0_i32 = arith.constant 0 : i32
    %c128_i32 = arith.constant 128 : i32
    %2 = arith.muli %c0_i32, %c128_i32 : i32
    %3 = tpu.assume_multiple %2, 128 : i32
    %c0_3 = arith.constant 0 : index
    %c0_4 = arith.constant 0 : index
    %4 = arith.index_cast %3 : i32 to index
    %5 = vector.load %arg1[%c0_3, %c0_4, %4] : memref<4x288x128xbf16, #tpu.memory_space<vmem>>, vector<1x288x128xbf16>
    %6 = vector.shape_cast %5 : vector<1x288x128xbf16> to vector<288x128xbf16>
    %cst = arith.constant dense<0.000000e+00> : vector<64x128xf32>
    %7 = tpu.matmul %0, %6, %cst {dimension_numbers = #tpu.dot_dimension_numbers<[1], [0], [0], [1], [0, 0, 1, 1], [], []>} : vector<64x288xbf16>, vector<288x128xbf16>, vector<64x128xf32> -> vector<64x128xf32>
    %c1 = arith.constant 1 : index
    %c0_5 = arith.constant 0 : index
    %8 = arith.index_cast %3 : i32 to index
    %9 = vector.load %arg1[%c1, %c0_5, %8] : memref<4x288x128xbf16, #tpu.memory_space<vmem>>, vector<1x288x128xbf16>
    %10 = vector.shape_cast %9 : vector<1x288x128xbf16> to vector<288x128xbf16>
    %cst_6 = arith.constant dense<0.000000e+00> : vector<64x128xf32>
    %11 = tpu.matmul %0, %10, %cst_6 {dimension_numbers = #tpu.dot_dimension_numbers<[1], [0], [0], [1], [0, 0, 1, 1], [], []>} : vector<64x288xbf16>, vector<288x128xbf16>, vector<64x128xf32> -> vector<64x128xf32>
    %12 = arith.maximumf %7, %11 : vector<64x128xf32>
    %c2 = arith.constant 2 : index
    %c0_7 = arith.constant 0 : index
    %13 = arith.index_cast %3 : i32 to index
    %14 = vector.load %arg1[%c2, %c0_7, %13] : memref<4x288x128xbf16, #tpu.memory_space<vmem>>, vector<1x288x128xbf16>
    %15 = vector.shape_cast %14 : vector<1x288x128xbf16> to vector<288x128xbf16>
    %cst_8 = arith.constant dense<0.000000e+00> : vector<64x128xf32>
    %16 = tpu.matmul %0, %15, %cst_8 {dimension_numbers = #tpu.dot_dimension_numbers<[1], [0], [0], [1], [0, 0, 1, 1], [], []>} : vector<64x288xbf16>, vector<288x128xbf16>, vector<64x128xf32> -> vector<64x128xf32>
    %17 = arith.maximumf %12, %16 : vector<64x128xf32>
    %c3 = arith.constant 3 : index
    %c0_9 = arith.constant 0 : index
    %18 = arith.index_cast %3 : i32 to index
    %19 = vector.load %arg1[%c3, %c0_9, %18] : memref<4x288x128xbf16, #tpu.memory_space<vmem>>, vector<1x288x128xbf16>
    %20 = vector.shape_cast %19 : vector<1x288x128xbf16> to vector<288x128xbf16>
    %cst_10 = arith.constant dense<0.000000e+00> : vector<64x128xf32>
    %21 = tpu.matmul %0, %20, %cst_10 {dimension_numbers = #tpu.dot_dimension_numbers<[1], [0], [0], [1], [0, 0, 1, 1], [], []>} : vector<64x288xbf16>, vector<288x128xbf16>, vector<64x128xf32> -> vector<64x128xf32>
    %22 = arith.maximumf %17, %21 : vector<64x128xf32>
    %23 = vector.broadcast %1 : vector<64x1xf32> to vector<64x128xf32>
    %24 = arith.addf %22, %23 : vector<64x128xf32>
    %cst_11 = arith.constant 0.000000e+00 : f32
    %25 = vector.broadcast %cst_11 : f32 to vector<64x128xf32>
    %26 = arith.maximumf %24, %25 : vector<64x128xf32>
    %27 = arith.truncf %26 : vector<64x128xf32> to vector<64x128xbf16>
    %c0_12 = arith.constant 0 : index
    %28 = arith.index_cast %3 : i32 to index
    %29 = vector.load %arg4[%c0_12, %28] : memref<64x128xbf16, #tpu.memory_space<vmem>>, vector<64x128xbf16>
    tpu.vector_store %arg4[%c0_12, %28], %27 {strides = array<i32>} : memref<64x128xbf16, #tpu.memory_space<vmem>>, vector<64x128xbf16>,
    %c1_i32 = arith.constant 1 : i32
    return
  }
  func.func @transform_0(%arg0: i32) -> (i32, i32, i32) {
    %c0_i32 = arith.constant 0 : i32
    %c0_i32_0 = arith.constant 0 : i32
    %c0_i32_1 = arith.constant 0 : i32
    return %c0_i32, %c0_i32_0, %arg0 : i32, i32, i32
  }
  func.func @transform_1(%arg0: i32) -> (i32, i32) {
    %c0_i32 = arith.constant 0 : i32
    %c0_i32_0 = arith.constant 0 : i32
    %c0_i32_1 = arith.constant 0 : i32
    return %c0_i32, %c0_i32_0 : i32, i32
  }
  func.func @transform_2(%arg0: i32) -> (i32, i32) {
    %c0_i32 = arith.constant 0 : i32
    %c0_i32_0 = arith.constant 0 : i32
    %c0_i32_1 = arith.constant 0 : i32
    return %c0_i32, %c0_i32_0 : i32, i32
  }
  func.func @transform_3(%arg0: i32) -> (i32, i32) {
    %c0_i32 = arith.constant 0 : i32
    %c0_i32_0 = arith.constant 0 : i32
    return %c0_i32, %arg0 : i32, i32
  }
}

module attributes {stable_mosaic.version = 11 : i64} {
  func.func @fc_dropout_kernel(%arg0: i32, %arg1: memref<32x1024xbf16, #tpu.memory_space<vmem>>, %arg2: memref<1024x128xbf16, #tpu.memory_space<vmem>>, %arg3: memref<1x128xf32, #tpu.memory_space<vmem>>, %arg4: memref<128x128xbf16, #tpu.memory_space<vmem>>, %arg5: memref<1x128xf32, #tpu.memory_space<vmem>>, %arg6: memref<32x128xi8, #tpu.memory_space<vmem>>, %arg7: memref<32x128xi8, #tpu.memory_space<vmem>>, %arg8: memref<32x128xf32, #tpu.memory_space<vmem>>) attributes {dimension_semantics = [#tpu.dimension_semantics<parallel>], iteration_bounds = array<i64: 1>, scalar_prefetch = 0 : i64, scratch_operands = 0 : i64, tpu.core_type = #tpu.core_type<tc>, window_params = [{transform_indices = @transform_0, window_bounds = array<i64: 32, 1024>}, {pipeline_mode = #tpu.pipeline_mode<synchronous>, transform_indices = @transform_1, window_bounds = array<i64: 1024, 128>}, {pipeline_mode = #tpu.pipeline_mode<synchronous>, transform_indices = @transform_2, window_bounds = array<i64: 1, 128>}, {pipeline_mode = #tpu.pipeline_mode<synchronous>, transform_indices = @transform_3, window_bounds = array<i64: 128, 128>}, {pipeline_mode = #tpu.pipeline_mode<synchronous>, transform_indices = @transform_4, window_bounds = array<i64: 1, 128>}, {transform_indices = @transform_5, window_bounds = array<i64: 32, 128>}, {transform_indices = @transform_6, window_bounds = array<i64: 32, 128>}, {transform_indices = @transform_7, window_bounds = array<i64: 32, 128>}]} {
    %c0 = arith.constant 0 : index
    %c0_0 = arith.constant 0 : index
    %0 = vector.load %arg1[%c0, %c0_0] : memref<32x1024xbf16, #tpu.memory_space<vmem>>, vector<32x1024xbf16>
    %c0_1 = arith.constant 0 : index
    %c0_2 = arith.constant 0 : index
    %1 = vector.load %arg2[%c0_1, %c0_2] : memref<1024x128xbf16, #tpu.memory_space<vmem>>, vector<1024x128xbf16>
    %cst = arith.constant dense<0.000000e+00> : vector<32x128xf32>
    %2 = tpu.matmul %0, %1, %cst {dimension_numbers = #tpu.dot_dimension_numbers<[1], [0], [0], [1], [0, 0, 1, 1], [], []>} : vector<32x1024xbf16>, vector<1024x128xbf16>, vector<32x128xf32> -> vector<32x128xf32>
    %c0_3 = arith.constant 0 : index
    %c0_4 = arith.constant 0 : index
    %3 = vector.load %arg3[%c0_3, %c0_4] : memref<1x128xf32, #tpu.memory_space<vmem>>, vector<1x128xf32>
    %4 = vector.broadcast %3 : vector<1x128xf32> to vector<32x128xf32>
    %5 = arith.addf %2, %4 : vector<32x128xf32>
    %cst_5 = arith.constant 0.000000e+00 : f32
    %6 = vector.broadcast %cst_5 : f32 to vector<32x128xf32>
    %7 = arith.maximumf %5, %6 : vector<32x128xf32>
    %c0_6 = arith.constant 0 : index
    %c0_7 = arith.constant 0 : index
    %8 = vector.load %arg6[%c0_6, %c0_7] : memref<32x128xi8, #tpu.memory_space<vmem>>, vector<32x128xi8>
    %9 = arith.sitofp %8 : vector<32x128xi8> to vector<32x128xf32>
    %10 = arith.mulf %7, %9 : vector<32x128xf32>
    %11 = arith.truncf %10 : vector<32x128xf32> to vector<32x128xbf16>
    %c0_8 = arith.constant 0 : index
    %c0_9 = arith.constant 0 : index
    %12 = vector.load %arg4[%c0_8, %c0_9] : memref<128x128xbf16, #tpu.memory_space<vmem>>, vector<128x128xbf16>
    %cst_10 = arith.constant dense<0.000000e+00> : vector<32x128xf32>
    %13 = tpu.matmul %11, %12, %cst_10 {dimension_numbers = #tpu.dot_dimension_numbers<[1], [0], [0], [1], [0, 0, 1, 1], [], []>} : vector<32x128xbf16>, vector<128x128xbf16>, vector<32x128xf32> -> vector<32x128xf32>
    %c0_11 = arith.constant 0 : index
    %c0_12 = arith.constant 0 : index
    %14 = vector.load %arg5[%c0_11, %c0_12] : memref<1x128xf32, #tpu.memory_space<vmem>>, vector<1x128xf32>
    %15 = vector.broadcast %14 : vector<1x128xf32> to vector<32x128xf32>
    %16 = arith.addf %13, %15 : vector<32x128xf32>
    %c0_13 = arith.constant 0 : index
    %c0_14 = arith.constant 0 : index
    %17 = vector.load %arg7[%c0_13, %c0_14] : memref<32x128xi8, #tpu.memory_space<vmem>>, vector<32x128xi8>
    %18 = arith.sitofp %17 : vector<32x128xi8> to vector<32x128xf32>
    %19 = arith.mulf %16, %18 : vector<32x128xf32>
    %c0_15 = arith.constant 0 : index
    %c0_16 = arith.constant 0 : index
    %20 = vector.load %arg8[%c0_15, %c0_16] : memref<32x128xf32, #tpu.memory_space<vmem>>, vector<32x128xf32>
    tpu.vector_store %arg8[%c0_15, %c0_16], %19 {strides = array<i32>} : memref<32x128xf32, #tpu.memory_space<vmem>>, vector<32x128xf32>,
    return
  }
  func.func @transform_0(%arg0: i32) -> (i32, i32) {
    %c0_i32 = arith.constant 0 : i32
    %c0_i32_0 = arith.constant 0 : i32
    return %arg0, %c0_i32 : i32, i32
  }
  func.func @transform_1(%arg0: i32) -> (i32, i32) {
    %c0_i32 = arith.constant 0 : i32
    %c0_i32_0 = arith.constant 0 : i32
    %c0_i32_1 = arith.constant 0 : i32
    return %c0_i32, %c0_i32_0 : i32, i32
  }
  func.func @transform_2(%arg0: i32) -> (i32, i32) {
    %c0_i32 = arith.constant 0 : i32
    %c0_i32_0 = arith.constant 0 : i32
    %c0_i32_1 = arith.constant 0 : i32
    return %c0_i32, %c0_i32_0 : i32, i32
  }
  func.func @transform_3(%arg0: i32) -> (i32, i32) {
    %c0_i32 = arith.constant 0 : i32
    %c0_i32_0 = arith.constant 0 : i32
    %c0_i32_1 = arith.constant 0 : i32
    return %c0_i32, %c0_i32_0 : i32, i32
  }
  func.func @transform_4(%arg0: i32) -> (i32, i32) {
    %c0_i32 = arith.constant 0 : i32
    %c0_i32_0 = arith.constant 0 : i32
    %c0_i32_1 = arith.constant 0 : i32
    return %c0_i32, %c0_i32_0 : i32, i32
  }
  func.func @transform_5(%arg0: i32) -> (i32, i32) {
    %c0_i32 = arith.constant 0 : i32
    %c0_i32_0 = arith.constant 0 : i32
    return %arg0, %c0_i32 : i32, i32
  }
  func.func @transform_6(%arg0: i32) -> (i32, i32) {
    %c0_i32 = arith.constant 0 : i32
    %c0_i32_0 = arith.constant 0 : i32
    return %arg0, %c0_i32 : i32, i32
  }
  func.func @transform_7(%arg0: i32) -> (i32, i32) {
    %c0_i32 = arith.constant 0 : i32
    %c0_i32_0 = arith.constant 0 : i32
    return %arg0, %c0_i32 : i32, i32
  }
}

</mosaic_0001>

<bundles_post_ra>
// kernel: dropout_cnn_forward.3
= control target key start
LH: loop header
LB: loop body
LE: loop exit
PB: predicated region body
PF: predicated region fallthrough
CT: control target
= control target key end

     0   :  { %vm47_vm0 = vcmask 1043456   ;;  %vm48_vm1 = vcmask 1044480   ;;  %v283_v2 = vmov 65535   ;;  %v284_v20 = vmov 0   ;;  %s361_s0 = inlined_call_operand.vmem [shape: bf16[4,9,128], index: 0, kind: input, shape index: {}]   ;;  %s362_s2 = inlined_call_operand.vmem [shape: f32[32,1], index: 2, kind: input, shape index: {}]   ;;  %s363_s1 = inlined_call_operand.vmem [shape: bf16[32,9], index: 1, kind: input, shape index: {}]   ;;  %s364_s3 = inlined_call_operand.vmem [shape: bf16[32,128], index: 3, kind: output, shape index: {}]  }
   0x1   :  { %v234_v0 = vld [vmem:[%s361_s0] sm:$0xf]  ;;  %v264_v1 = vld [vmem:[%s361_s0] sm:$0x10]  ;;  %v49_v3 = vsel %vm47_vm0, 4294967295, %v283_v2  ;;  %v21_v16 = vld [vmem:[%s362_s2 + $0x10] sm:$0xff]  ;;  %281 = vset.pattern.permute.xlu0 %v284_v20  ;;  %282 = vset.pattern.permute.xlu1 %v284_v20 }
   0x2   :  { %v235_v4 = vor.u32 %v264_v1, %v234_v0  ;;  %v50_v5 = vsel %vm48_vm1, %v49_v3, 0  ;;  %v242_v6 = vld [vmem:[%s361_s0 + $0x8] sm:$0xf]  ;;  %v265_v7 = vld [vmem:[%s361_s0 + $0x8] sm:$0x10]  ;;  %v19_v15 = vld [vmem:[%s362_s2] sm:$0xff]  ;;  %193 = vperm.xlu1 %282, %v21_v16  }
   0x3   :  { %v243_v8 = vor.u32 %v265_v7, %v242_v6  ;;  %v250_v9 = vld [vmem:[%s361_s0 + $0x10] sm:$0xf]  ;;  %v266_v10 = vld [vmem:[%s361_s0 + $0x10] sm:$0x10]  ;;  %v258_v11 = vld [vmem:[%s361_s0 + $0x18] sm:$0xf]  ;;  %183 = vperm.xlu0 %281, %v19_v15  }
   0x4   :  { %v52_v12 = vand.u32 %v235_v4, %v50_v5  ;;  %v251_v13 = vor.u32 %v266_v10, %v250_v9  ;;  %v267_v14 = vld [vmem:[%s361_s0 + $0x18] sm:$0x10]  ;;  %v262_v19 = vld [vmem:[%s363_s1] sm:$0xff]  ;;  %vm40_vm2 = vcmask 72704   ;;  %v20_v23 = vld [vmem:[%s362_s2 + $0x8] sm:$0xff] }
   0x5   :  { %v84_v17 = vand.u32 %v243_v8, %v50_v5  ;;  %v259_v18 = vor.u32 %v267_v14, %v258_v11  ;;  %v22_v24 = vld [vmem:[%s362_s2 + $0x18] sm:$0xff]  ;;  %v263_v25 = vld [vmem:[%s363_s1 + $0x8] sm:$0xff] }
   0x6   :  { %61 = vmatpush.bf16.msra.mxu0 %v52_v12  ;;  %v120_v21 = vand.u32 %v251_v13, %v50_v5 }
   0x7   :  { %93 = vmatpush.bf16.msra.mxu1 %v84_v17  ;;  %v156_v22 = vand.u32 %v259_v18, %v50_v5 }
   0x8   :  { %129 = vmatpush.bf16.msra.mxu2 %v120_v21 }
   0x9   :  { %165 = vmatpush.bf16.msra.mxu3 %v156_v22  ;;  %236 = vmatmul.msk.bf16.vlgmr.msra.gmra.mxu0 %vm40_vm2, %v262_v19 }
   0xa   :  { %244 = vmatmul.msk.bf16.vlgmr.msra.gmra.mxu1 %vm40_vm2, %v262_v19  ;;  %198 = vperm.xlu1 %282, %v22_v24  }
   0xb   :  { %252 = vmatmul.msk.bf16.vlgmr.msra.gmra.mxu2 %vm40_vm2, %v262_v19  ;;  %188 = vperm.xlu0 %281, %v20_v23  }
   0xc   :  { %260 = vmatmul.msk.bf16.vlgmr.msra.gmra.mxu3 %vm40_vm2, %v262_v19 }
  0x19   :  { %237 = vmatmul.msk.bf16.gmra.mxu0 %vm40_vm2, %v263_v25 }
  0x1a   :  { %245 = vmatmul.msk.bf16.gmra.mxu1 %vm40_vm2, %v263_v25 }
  0x1b   :  { %253 = vmatmul.msk.bf16.gmra.mxu2 %vm40_vm2, %v263_v25 }
  0x1c   :  { %261 = vmatmul.msk.bf16.gmra.mxu3 %vm40_vm2, %v263_v25 }
  0x74   :  { %v194_v52 = vpop.permute.xlu1 %193 }
  0x75   :  { %v184_v29 = vpop.permute.xlu0 %183 }
  0x7c   :  { %v199_v63 = vpop.permute.xlu1 %198 }
  0x7d   :  { %v189_v40 = vpop.permute.xlu0 %188 }
  0x86   :  { %v63_v26 = vpop.f32.mrf.mxu0 }
  0x87   :  { %v95_v27 = vpop.f32.mrf.mxu1 }
  0x88   :  { %v105_v28 = vmax.f32 %v63_v26, %v95_v27 }
  0x8e   :  { %v131_v30 = vpop.f32.mrf.mxu2  ;;  %v65_v31 = vpop.f32.mrf.mxu0 }
  0x8f   :  { %v167_v32 = vpop.f32.mrf.mxu3  ;;  %v97_v33 = vpop.f32.mrf.mxu1  ;;  %v141_v34 = vmax.f32 %v105_v28, %v131_v30 }
  0x90   :  { %v106_v36 = vmax.f32 %v65_v31, %v97_v33 }
  0x91   :  { %v177_v35 = vmax.f32 %v141_v34, %v167_v32 }
  0x93   :  { %v201_v43 = vadd.f32 %v184_v29, %v177_v35 }
  0x95   :  { %v205_v46 = vmax.f32 %v201_v43, 0.0 }
  0x96   :  { %v133_v37 = vpop.f32.mrf.mxu2  ;;  %v68_v41 = vpop.f32.mrf.mxu0 }
  0x97   :  { %v142_v38 = vmax.f32 %v106_v36, %v133_v37  ;;  %v169_v39 = vpop.f32.mrf.mxu3  ;;  %v100_v42 = vpop.f32.mrf.mxu1 }
  0x98   :  { %v107_v47 = vmax.f32 %v68_v41, %v100_v42 }
  0x99   :  { %v178_v44 = vmax.f32 %v142_v38, %v169_v39 }
  0x9b   :  { %v202_v45 = vadd.f32 %v189_v40, %v178_v44 }
  0x9d   :  { %v206_v48 = vmax.f32 %v202_v45, 0.0 }
  0x9e   :  { %v136_v49 = vpop.f32.mrf.mxu2  ;;  %v70_v54 = vpop.f32.mrf.mxu0 }
  0x9f   :  { %v271_v50 = vpack.c.bf16 %v206_v48, %v205_v46  ;;  %v172_v51 = vpop.f32.mrf.mxu3  ;;  %v143_v53 = vmax.f32 %v107_v47, %v136_v49  ;;  %v102_v55 = vpop.f32.mrf.mxu1 }
  0xa0   :  { %v108_v57 = vmax.f32 %v70_v54, %v102_v55 }
  0xa1   :  { %272 = vst [vmem:[%s364_s3] sm:$0xff] %v271_v50   ;;  %v179_v56 = vmax.f32 %v143_v53, %v172_v51 }
  0xa3   :  { %v203_v61 = vadd.f32 %v194_v52, %v179_v56 }
  0xa5   :  { %v207_v1 = vmax.f32 %v203_v61, 0.0 }
  0xa6   :  { %v138_v58 = vpop.f32.mrf.mxu2 }
  0xa7   :  { %v144_v59 = vmax.f32 %v108_v57, %v138_v58  ;;  %v174_v60 = vpop.f32.mrf.mxu3 }
  0xa9   :  { %v180_v62 = vmax.f32 %v144_v59, %v174_v60 }
  0xab   :  { %v204_v0 = vadd.f32 %v199_v63, %v180_v62 }
  0xad   :  { %v208_v2 = vmax.f32 %v204_v0, 0.0 }
  0xaf   :  { %v276_v3 = vpack.c.bf16 %v208_v2, %v207_v1 }
  0xb1   :  { %278 = vst [vmem:[%s364_s3 + $0x8] sm:$0xff] %v276_v3  }

// kernel: dropout_cnn_forward.4
= control target key start
LH: loop header
LB: loop body
LE: loop exit
PB: predicated region body
PF: predicated region fallthrough
CT: control target
= control target key end

     0   :  { %vm243_vm0 = vcmask 261120   ;;  %s2227_s0 = inlined_call_operand.vmem [shape: bf16[4,288,128], index: 0, kind: input, shape index: {}]   ;;  %s2228_s1 = inlined_call_operand.vmem [shape: bf16[64,288], index: 1, kind: input, shape index: {}]   ;;  %s2229_s2 = inlined_call_operand.vmem [shape: f32[64,1], index: 2, kind: input, shape index: {}]   ;;  %s2230_s3 = inlined_call_operand.vmem [shape: bf16[64,128], index: 3, kind: output, shape index: {}]  }
   0x1   :  { %v1627_v0 = vld [vmem:[%s2227_s0 + $0x38] sm:$0xff]  ;;  %v1637_v2 = vld [vmem:[%s2227_s0 + $0x88] sm:$0xff]  ;;  %v1626_v4 = vld [vmem:[%s2227_s0 + $0x30] sm:$0xff] }
   0x2   :  { %v1635_v1 = vld [vmem:[%s2227_s0 + $0x78] sm:$0xff]  ;;  %v1645_v3 = vld [vmem:[%s2227_s0 + $0xc8] sm:$0xff]  ;;  %256 = vmatpush.bf16.msra.mxu0 %v1627_v0  ;;  %v1634_v5 = vld [vmem:[%s2227_s0 + $0x70] sm:$0xff]  ;;  %320 = vmatpush.bf16.msra.mxu2 %v1637_v2 }
   0x3   :  { %285 = vmatpush.bf16.msra.mxu1 %v1635_v1  ;;  %v1636_v6 = vld [vmem:[%s2227_s0 + $0x80] sm:$0xff]  ;;  %490 = vmatpush.bf16.msra.mxu3 %v1645_v3  ;;  %v1158_v8 = vld [vmem:[%s2228_s1 + $0x8] sm:$0xf]  ;;  %v1610_v9 = vld [vmem:[%s2228_s1 + $0x10] sm:$0xf0] }
   0x4   :  { %v1644_v7 = vld [vmem:[%s2227_s0 + $0xc0] sm:$0xff]  ;;  %v1770_v10 = vor.u32 %v1610_v9, %v1158_v8  ;;  %v1625_v11 = vld [vmem:[%s2227_s0 + $0x28] sm:$0xff]  ;;  %v1643_v13 = vld [vmem:[%s2227_s0 + $0xb8] sm:$0xff] }
   0x5   :  { %v1633_v12 = vld [vmem:[%s2227_s0 + $0x68] sm:$0xff]  ;;  %v1624_v14 = vld [vmem:[%s2227_s0 + $0x20] sm:$0xff]  ;;  %v1642_v17 = vld [vmem:[%s2227_s0 + $0xb0] sm:$0xff] }
   0x6   :  { %257 = vmatpush.bf16.msra.mxu0 %v1626_v4  ;;  %321 = vmatpush.bf16.msra.mxu2 %v1636_v6  ;;  %v1653_v15 = vld [vmem:[%s2227_s0 + $0x108] sm:$0xff]  ;;  %v1632_v16 = vld [vmem:[%s2227_s0 + $0x60] sm:$0xff]  ;;  %v1623_v19 = vld [vmem:[%s2227_s0 + $0x18] sm:$0xff] }
   0x7   :  { %286 = vmatpush.bf16.msra.mxu1 %v1634_v5  ;;  %491 = vmatpush.bf16.msra.mxu3 %v1644_v7  ;;  %v1652_v18 = vld [vmem:[%s2227_s0 + $0x100] sm:$0xff]  ;;  %v1631_v20 = vld [vmem:[%s2227_s0 + $0x58] sm:$0xff]  ;;  %v1641_v21 = vld [vmem:[%s2227_s0 + $0xa8] sm:$0xff] }
   0x8   :  { %v1651_v22 = vld [vmem:[%s2227_s0 + $0xf8] sm:$0xff]  ;;  %v1622_v23 = vld [vmem:[%s2227_s0 + $0x10] sm:$0xff]  ;;  %v1640_v25 = vld [vmem:[%s2227_s0 + $0xa0] sm:$0xff] }
   0x9   :  { %1268 = vmatmul.msk.bf16.vlgmr.msra.gmra.mxu2 %vm243_vm0, %v1770_v10  ;;  %v1630_v24 = vld [vmem:[%s2227_s0 + $0x50] sm:$0xff]  ;;  %v1170_v26 = vld [vmem:[%s2228_s1 + $0x20] sm:$0xf]  ;;  %v1613_v27 = vld [vmem:[%s2228_s1 + $0x28] sm:$0xf0] }
   0xa   :  { %258 = vmatpush.bf16.msra.mxu0 %v1625_v11  ;;  %519 = vmatpush.bf16.msrb.mxu2 %v1653_v15  ;;  %v1650_v28 = vld [vmem:[%s2227_s0 + $0xf0] sm:$0xff]  ;;  %v1828_v29 = vor.u32 %v1613_v27, %v1170_v26  ;;  %v1621_v30 = vld [vmem:[%s2227_s0 + $0x8] sm:$0xff]  ;;  %v1639_v32 = vld [vmem:[%s2227_s0 + $0x98] sm:$0xff] }
   0xb   :  { %287 = vmatpush.bf16.msra.mxu1 %v1633_v12  ;;  %492 = vmatpush.bf16.msra.mxu3 %v1643_v13  ;;  %v1629_v31 = vld [vmem:[%s2227_s0 + $0x48] sm:$0xff]  ;;  %v1620_v33 = vld [vmem:[%s2227_s0] sm:$0xff]  ;;  %v1638_v38 = vld [vmem:[%s2227_s0 + $0x90] sm:$0xff] }
   0xc   :  { %v1649_v34 = vld [vmem:[%s2227_s0 + $0xe8] sm:$0xff]  ;;  %v1628_v35 = vld [vmem:[%s2227_s0 + $0x40] sm:$0xff]  ;;  %v1152_v40 = vld [vmem:[%s2228_s1 + $0xc] sm:$0xf0] }
   0xd   :  { %v1150_v36 = vld [vmem:[%s2228_s1] sm:$0xf]  ;;  %v1609_v37 = vld [vmem:[%s2228_s1 + $0x8] sm:$0xf0]  ;;  %v1608_v39 = vld [vmem:[%s2228_s1 + $0x4] sm:$0xf] }
   0xe   :  { %259 = vmatpush.bf16.msra.mxu0 %v1624_v14  ;;  %520 = vmatpush.bf16.msrb.mxu2 %v1652_v18  ;;  %v1671_v41 = vld [vmem:[%s2227_s0 + $0x198] sm:$0xff]  ;;  %v1871_v43 = vor.u32 %v1609_v37, %v1150_v36  ;;  %v1876_v45 = vor.u32 %v1608_v39, %v1152_v40  ;;  %v1648_v46 = vld [vmem:[%s2227_s0 + $0xe0] sm:$0xff]  ;;  %v1670_v47 = vld [vmem:[%s2227_s0 + $0x190] sm:$0xff] }
   0xf   :  { %288 = vmatpush.bf16.msra.mxu1 %v1632_v16  ;;  %493 = vmatpush.bf16.msra.mxu3 %v1642_v17  ;;  %v1655_v42 = vld [vmem:[%s2227_s0 + $0x118] sm:$0xff]  ;;  %v1662_v48 = vld [vmem:[%s2227_s0 + $0x150] sm:$0xff]  ;;  %v1616_v51 = vld [vmem:[%s2228_s1 + $0x40] sm:$0xf0] }
  0x10   :  { %v1663_v44 = vld [vmem:[%s2227_s0 + $0x158] sm:$0xff]  ;;  %v1654_v49 = vld [vmem:[%s2227_s0 + $0x110] sm:$0xff]  ;;  %v1669_v53 = vld [vmem:[%s2227_s0 + $0x188] sm:$0xff] }
  0x11   :  { %v1182_v50 = vld [vmem:[%s2228_s1 + $0x38] sm:$0xf]  ;;  %v1661_v54 = vld [vmem:[%s2227_s0 + $0x148] sm:$0xff]  ;;  %v1646_v56 = vld [vmem:[%s2227_s0 + $0xd0] sm:$0xff] }
  0x12   :  { %260 = vmatpush.bf16.msra.mxu0 %v1623_v19  ;;  %521 = vmatpush.bf16.msrb.mxu2 %v1651_v22  ;;  %v1647_v52 = vld [vmem:[%s2227_s0 + $0xd8] sm:$0xff]  ;;  %v1908_v55 = vor.u32 %v1616_v51, %v1182_v50  ;;  %v1668_v57 = vld [vmem:[%s2227_s0 + $0x180] sm:$0xff]  ;;  %v1164_v62 = vld [vmem:[%s2228_s1 + $0x24] sm:$0xf0]  ;;  %v1719_v51 = vmov 0  }
  0x13   :  { %289 = vmatpush.bf16.msra.mxu1 %v1631_v20  ;;  %494 = vmatpush.bf16.msra.mxu3 %v1641_v21  ;;  %v1660_v58 = vld [vmem:[%s2227_s0 + $0x140] sm:$0xff]  ;;  %v1162_v59 = vld [vmem:[%s2228_s1 + $0x18] sm:$0xf]  ;;  %v1611_v61 = vld [vmem:[%s2228_s1 + $0x1c] sm:$0xf] }
  0x14   :  { %v1612_v60 = vld [vmem:[%s2228_s1 + $0x20] sm:$0xf0]  ;;  %v1667_v63 = vld [vmem:[%s2227_s0 + $0x178] sm:$0xff]  ;;  %v1941_v2 = vor.u32 %v1611_v61, %v1164_v62  ;;  %v1666_v3 = vld [vmem:[%s2227_s0 + $0x170] sm:$0xff]  ;;  %1716 = vset.pattern.permute.xlu0 %v1719_v51  ;;  %1717 = vset.pattern.permute.xlu1 %v1719_v51 }
  0x15   :  { %v1936_v0 = vor.u32 %v1612_v60, %v1162_v59  ;;  %v1659_v1 = vld [vmem:[%s2227_s0 + $0x138] sm:$0xff]  ;;  %v1658_v4 = vld [vmem:[%s2227_s0 + $0x130] sm:$0xff]  ;;  %v1665_v7 = vld [vmem:[%s2227_s0 + $0x168] sm:$0xff]  ;;  %1718 = vset.pattern.permute.xlu2 %v1719_v51 }
  0x16   :  { %261 = vmatpush.bf16.msra.mxu0 %v1622_v23  ;;  %522 = vmatpush.bf16.msrb.mxu2 %v1650_v28  ;;  %v1194_v5 = vld [vmem:[%s2228_s1 + $0x50] sm:$0xf]  ;;  %v1619_v6 = vld [vmem:[%s2228_s1 + $0x58] sm:$0xf0]  ;;  %v1657_v8 = vld [vmem:[%s2227_s0 + $0x128] sm:$0xff] }
  0x17   :  { %290 = vmatpush.bf16.msra.mxu1 %v1630_v24  ;;  %495 = vmatpush.bf16.msra.mxu3 %v1640_v25  ;;  %v1964_v9 = vor.u32 %v1619_v6, %v1194_v5  ;;  %v1174_v11 = vld [vmem:[%s2228_s1 + $0x30] sm:$0xf]  ;;  %v1615_v12 = vld [vmem:[%s2228_s1 + $0x38] sm:$0xf0]  ;;  %v1664_v13 = vld [vmem:[%s2227_s0 + $0x160] sm:$0xff] }
  0x18   :  { %v1656_v14 = vld [vmem:[%s2227_s0 + $0x120] sm:$0xff]  ;;  %v1673_v15 = vld [vmem:[%s2227_s0 + $0x1a8] sm:$0xff]  ;;  %v1614_v16 = vld [vmem:[%s2228_s1 + $0x34] sm:$0xf]  ;;  %v1989_v18 = vor.u32 %v1615_v12, %v1174_v11 }
  0x19   :  { %1269 = vmatmul.msk.bf16.gmra.mxu2 %vm243_vm0, %v1828_v29  ;;  %v1176_v17 = vld [vmem:[%s2228_s1 + $0x3c] sm:$0xf0]  ;;  %v1691_v20 = vld [vmem:[%s2227_s0 + $0x238] sm:$0xff]  ;;  %v1681_v21 = vld [vmem:[%s2227_s0 + $0x1e8] sm:$0xff] }
  0x1a   :  { %262 = vmatpush.bf16.msra.mxu0 %v1621_v30  ;;  %523 = vmatpush.bf16.msrb.mxu2 %v1649_v34  ;;  %v1991_v19 = vor.u32 %v1614_v16, %v1176_v17  ;;  %v1689_v22 = vld [vmem:[%s2227_s0 + $0x228] sm:$0xff]  ;;  %v1618_v24 = vld [vmem:[%s2228_s1 + $0x50] sm:$0xf0]  ;;  %v1680_v25 = vld [vmem:[%s2227_s0 + $0x1e0] sm:$0xff] }
  0x1b   :  { %291 = vmatpush.bf16.msra.mxu1 %v1629_v31  ;;  %496 = vmatpush.bf16.msra.mxu3 %v1639_v32  ;;  %v1186_v23 = vld [vmem:[%s2228_s1 + $0x48] sm:$0xf]  ;;  %v1688_v26 = vld [vmem:[%s2227_s0 + $0x220] sm:$0xff]  ;;  %v1617_v27 = vld [vmem:[%s2228_s1 + $0x4c] sm:$0xf] }
  0x1c   :  { %v1188_v28 = vld [vmem:[%s2228_s1 + $0x54] sm:$0xf0]  ;;  %v2024_v30 = vor.u32 %v1618_v24, %v1186_v23  ;;  %v1678_v34 = vld [vmem:[%s2227_s0 + $0x1d0] sm:$0xff]  ;;  %v1672_v36 = vld [vmem:[%s2227_s0 + $0x1a0] sm:$0xff] }
  0x1d   :  { %v2026_v31 = vor.u32 %v1617_v27, %v1188_v28  ;;  %v1679_v32 = vld [vmem:[%s2227_s0 + $0x1d8] sm:$0xff]  ;;  %v1690_v37 = vld [vmem:[%s2227_s0 + $0x230] sm:$0xff]  ;;  %v1685_v39 = vld [vmem:[%s2227_s0 + $0x208] sm:$0xff] }
  0x1e   :  { %263 = vmatpush.bf16.msra.mxu0 %v1620_v33  ;;  %524 = vmatpush.bf16.msrb.mxu2 %v1648_v46  ;;  %v1687_v33 = vld [vmem:[%s2227_s0 + $0x218] sm:$0xff]  ;;  %v1676_v40 = vld [vmem:[%s2227_s0 + $0x1c0] sm:$0xff]  ;;  %v1674_v46 = vld [vmem:[%s2227_s0 + $0x1b0] sm:$0xff] }
  0x1f   :  { %292 = vmatpush.bf16.msra.mxu1 %v1628_v35  ;;  %497 = vmatpush.bf16.msra.mxu3 %v1638_v38  ;;  %v1686_v35 = vld [vmem:[%s2227_s0 + $0x210] sm:$0xff]  ;;  %v1677_v38 = vld [vmem:[%s2227_s0 + $0x1c8] sm:$0xff]  ;;  %v31_v50 = vld [vmem:[%s2229_s2] sm:$0xff] }
  0x20   :  { %1071 = vperm.xlu0 %1716, %v31_v50   ;;  %v33_v61 = vld [vmem:[%s2229_s2 + $0x10] sm:$0xff] }
  0x21   :  { %264 = vmatmul.bf16.vlgmr.msra.gmra.mxu0 %v1871_v43  ;;  %1081 = vperm.xlu1 %1717, %v33_v61  }
  0x22   :  { %554 = vmatpush.bf16.msrb.mxu0 %v1655_v42  ;;  %293 = vmatmul.bf16.vlgmr.msra.gmra.mxu1 %v1876_v45  ;;  %v1675_v42 = vld [vmem:[%s2227_s0 + $0x1b8] sm:$0xff] }
  0x23   :  { %761 = vmatpush.bf16.msrb.mxu3 %v1671_v41  ;;  %732 = vmatpush.bf16.msrb.mxu1 %v1663_v44  ;;  %v1684_v41 = vld [vmem:[%s2227_s0 + $0x200] sm:$0xff]  ;;  %v1683_v44 = vld [vmem:[%s2227_s0 + $0x1f8] sm:$0xff] }
  0x24   :  { %498 = vmatmul.bf16.vlgmr.msra.gmra.mxu3 %v1871_v43  ;;  %525 = vmatpush.bf16.msrb.mxu2 %v1647_v52 }
  0x26   :  { %555 = vmatpush.bf16.msrb.mxu0 %v1654_v49 }
  0x27   :  { %762 = vmatpush.bf16.msrb.mxu3 %v1670_v47  ;;  %733 = vmatpush.bf16.msrb.mxu1 %v1662_v48  ;;  %v1682_v47 = vld [vmem:[%s2227_s0 + $0x1f0] sm:$0xff] }
  0x28   :  { %526 = vmatpush.bf16.msrb.mxu2 %v1646_v56 }
  0x29   :  { %1270 = vmatmul.msk.bf16.gmra.mxu2 %vm243_vm0, %v1908_v55 }
  0x2a   :  { %974 = vmatpush.bf16.msra.mxu0 %v1681_v21 }
  0x2b   :  { %763 = vmatpush.bf16.msrb.mxu3 %v1669_v53  ;;  %734 = vmatpush.bf16.msrb.mxu1 %v1661_v54  ;;  %v32_v53 = vld [vmem:[%s2229_s2 + $0x8] sm:$0xff] }
  0x2c   :  { %796 = vmatpush.bf16.msra.mxu2 %v1673_v15  ;;  %1076 = vperm.xlu0 %1716, %v32_v53  }
  0x2e   :  { %975 = vmatpush.bf16.msra.mxu0 %v1680_v25 }
  0x2f   :  { %764 = vmatpush.bf16.msrb.mxu3 %v1668_v57  ;;  %735 = vmatpush.bf16.msrb.mxu1 %v1660_v58 }
  0x30   :  { %797 = vmatpush.bf16.msra.mxu2 %v1672_v36 }
  0x31   :  { %269 = vmatmul.bf16.gmra.mxu0 %v1936_v0 }
  0x32   :  { %298 = vmatmul.bf16.gmra.mxu1 %v1941_v2  ;;  %976 = vmatpush.bf16.msra.mxu0 %v1679_v32 }
  0x33   :  { %765 = vmatpush.bf16.msrb.mxu3 %v1667_v63  ;;  %736 = vmatpush.bf16.msrb.mxu1 %v1659_v1 }
  0x34   :  { %503 = vmatmul.bf16.gmra.mxu3 %v1936_v0 }
  0x36   :  { %977 = vmatpush.bf16.msra.mxu0 %v1678_v34 }
  0x37   :  { %766 = vmatpush.bf16.msrb.mxu3 %v1666_v3  ;;  %737 = vmatpush.bf16.msrb.mxu1 %v1658_v4 }
  0x39   :  { %1271 = vmatmul.msk.bf16.gmra.mxu2 %vm243_vm0, %v1964_v9 }
  0x3a   :  { %978 = vmatpush.bf16.msra.mxu0 %v1677_v38 }
  0x3b   :  { %767 = vmatpush.bf16.msrb.mxu3 %v1665_v7  ;;  %738 = vmatpush.bf16.msrb.mxu1 %v1657_v8 }
  0x3e   :  { %979 = vmatpush.bf16.msra.mxu0 %v1676_v40  ;;  %v36_v40 = vld [vmem:[%s2229_s2 + $0x28] sm:$0xff] }
  0x3f   :  { %768 = vmatpush.bf16.msrb.mxu3 %v1664_v13  ;;  %739 = vmatpush.bf16.msrb.mxu1 %v1656_v14 }
  0x41   :  { %274 = vmatmul.bf16.gmra.mxu0 %v1989_v18 }
  0x42   :  { %303 = vmatmul.bf16.gmra.mxu1 %v1991_v19  ;;  %980 = vmatpush.bf16.msra.mxu0 %v1675_v42 }
  0x43   :  { %1038 = vmatpush.bf16.msra.mxu3 %v1691_v20  ;;  %1003 = vmatpush.bf16.msra.mxu1 %v1689_v22 }
  0x44   :  { %508 = vmatmul.bf16.gmra.mxu3 %v1989_v18 }
  0x46   :  { %981 = vmatpush.bf16.msra.mxu0 %v1674_v46 }
  0x47   :  { %1004 = vmatpush.bf16.msra.mxu1 %v1688_v26  ;;  %1039 = vmatpush.bf16.msra.mxu3 %v1690_v37 }
  0x49   :  { %527 = vmatmul.bf16.vlgmr.msrb.gmra.mxu2 %v1876_v45 }
  0x4b   :  { %1005 = vmatpush.bf16.msra.mxu1 %v1687_v33 }
  0x4f   :  { %1006 = vmatpush.bf16.msra.mxu1 %v1686_v35 }
  0x51   :  { %279 = vmatmul.bf16.gmra.mxu0 %v2024_v30 }
  0x52   :  { %308 = vmatmul.bf16.gmra.mxu1 %v2026_v31 }
  0x53   :  { %1007 = vmatpush.bf16.msra.mxu1 %v1685_v39 }
  0x54   :  { %513 = vmatmul.bf16.gmra.mxu3 %v2024_v30 }
  0x57   :  { %1008 = vmatpush.bf16.msra.mxu1 %v1684_v41 }
  0x59   :  { %532 = vmatmul.bf16.gmra.mxu2 %v1941_v2 }
  0x5b   :  { %1009 = vmatpush.bf16.msra.mxu1 %v1683_v44 }
  0x5f   :  { %1010 = vmatpush.bf16.msra.mxu1 %v1682_v47 }
  0x61   :  { %1380 = vmatmul.msk.bf16.vlgmr.msrb.gmra.mxu0 %vm243_vm0, %v1770_v10 }
  0x62   :  { %740 = vmatmul.bf16.vlgmr.msrb.gmra.mxu1 %v1871_v43 }
  0x64   :  { %769 = vmatmul.bf16.vlgmr.msrb.gmra.mxu3 %v1876_v45 }
  0x69   :  { %537 = vmatmul.bf16.gmra.mxu2 %v1991_v19 }
  0x71   :  { %1381 = vmatmul.msk.bf16.gmra.mxu0 %vm243_vm0, %v1828_v29 }
  0x72   :  { %745 = vmatmul.bf16.gmra.mxu1 %v1936_v0 }
  0x74   :  { %774 = vmatmul.bf16.gmra.mxu3 %v1941_v2 }
  0x79   :  { %542 = vmatmul.bf16.gmra.mxu2 %v2026_v31 }
  0x81   :  { %1382 = vmatmul.msk.bf16.gmra.mxu0 %vm243_vm0, %v1908_v55 }
  0x82   :  { %750 = vmatmul.bf16.gmra.mxu1 %v1989_v18 }
  0x84   :  { %779 = vmatmul.bf16.gmra.mxu3 %v1991_v19 }
  0x89   :  { %1492 = vmatmul.msk.bf16.vlgmr.msra.gmra.mxu2 %vm243_vm0, %v1770_v10 }
  0x8c   :  { %v323_v48 = vpop.f32.mrf.mxu2 }
  0x91   :  { %1383 = vmatmul.msk.bf16.gmra.mxu0 %vm243_vm0, %v1964_v9 }
  0x92   :  { %755 = vmatmul.bf16.gmra.mxu1 %v2024_v30 }
  0x94   :  { %784 = vmatmul.bf16.gmra.mxu3 %v2026_v31  ;;  %v325_v49 = vpop.f32.mrf.mxu2 }
  0x99   :  { %1493 = vmatmul.msk.bf16.gmra.mxu2 %vm243_vm0, %v1828_v29 }
  0x9c   :  { %v328_v52 = vpop.f32.mrf.mxu2 }
  0x9e   :  { %v265_v54 = vpop.f32.mrf.mxu0 }
  0x9f   :  { %v294_v56 = vpop.f32.mrf.mxu1 }
  0xa0   :  { %v295_v57 = vadd.f32 %v294_v56, %v265_v54 }
  0xa1   :  { %982 = vmatmul.bf16.vlgmr.msra.gmra.mxu0 %v1871_v43 }
  0xa2   :  { %v2103_v58 = vadd.f32 %v323_v48, %v295_v57  ;;  %1011 = vmatmul.bf16.vlgmr.msra.gmra.mxu1 %v1876_v45 }
  0xa4   :  { %1604 = vmatmul.msk.bf16.vlgmr.msra.gmra.mxu3 %vm243_vm0, %v1770_v10  ;;  %v330_v59 = vpop.f32.mrf.mxu2  ;;  %v34_v10 = vld [vmem:[%s2229_s2 + $0x18] sm:$0xff] }
  0xa5   :  { %1086 = vperm.xlu1 %1717, %v34_v10  }
  0xa6   :  { %v267_v62 = vpop.f32.mrf.mxu0 }
  0xa7   :  { %v499_v60 = vpop.f32.mrf.mxu3  ;;  %v296_v63 = vpop.f32.mrf.mxu1 }
  0xa8   :  { %v297_v1 = vadd.f32 %v296_v63, %v267_v62 }
  0xa9   :  { %1494 = vmatmul.msk.bf16.gmra.mxu2 %vm243_vm0, %v1908_v55 }
  0xaa   :  { %v2111_v3 = vadd.f32 %v325_v49, %v297_v1 }
  0xac   :  { %v333_v43 = vpop.f32.mrf.mxu2 }
  0xae   :  { %v270_v4 = vpop.f32.mrf.mxu0 }
  0xaf   :  { %v2115_v45 = vpop.f32.mrf.mxu3  ;;  %v299_v5 = vpop.f32.mrf.mxu1 }
  0xb0   :  { %v300_v6 = vadd.f32 %v299_v5, %v270_v4 }
  0xb1   :  { %987 = vmatmul.bf16.gmra.mxu0 %v1936_v0 }
  0xb2   :  { %v2121_v7 = vadd.f32 %v328_v52, %v300_v6  ;;  %1016 = vmatmul.bf16.gmra.mxu1 %v1941_v2  ;;  %v38_v2 = vld [vmem:[%s2229_s2 + $0x38] sm:$0xff] }
  0xb3   :  { %1106 = vperm.xlu1 %1717, %v38_v2  }
  0xb4   :  { %1605 = vmatmul.msk.bf16.gmra.mxu3 %vm243_vm0, %v1828_v29  ;;  %v335_v8 = vpop.f32.mrf.mxu2  ;;  %v37_v29 = vld [vmem:[%s2229_s2 + $0x30] sm:$0xff] }
  0xb5   :  { %1101 = vperm.xlu0 %1716, %v37_v29  }
  0xb6   :  { %v272_v12 = vpop.f32.mrf.mxu0 }
  0xb7   :  { %v504_v11 = vpop.f32.mrf.mxu3  ;;  %v301_v13 = vpop.f32.mrf.mxu1 }
  0xb8   :  { %v302_v14 = vadd.f32 %v301_v13, %v272_v12 }
  0xb9   :  { %1495 = vmatmul.msk.bf16.gmra.mxu2 %vm243_vm0, %v1964_v9 }
  0xba   :  { %v2126_v15 = vadd.f32 %v330_v59, %v302_v14 }
  0xbc   :  { %v338_v16 = vpop.f32.mrf.mxu2 }
  0xbe   :  { %v275_v0 = vpop.f32.mrf.mxu0 }
  0xbf   :  { %v506_v17 = vpop.f32.mrf.mxu3  ;;  %v304_v20 = vpop.f32.mrf.mxu1 }
  0xc0   :  { %v305_v21 = vadd.f32 %v304_v20, %v275_v0 }
  0xc1   :  { %992 = vmatmul.bf16.gmra.mxu0 %v1989_v18  ;;  %v35_v18 = vld [vmem:[%s2229_s2 + $0x20] sm:$0xff] }
  0xc2   :  { %v2137_v22 = vadd.f32 %v333_v43, %v305_v21  ;;  %1021 = vmatmul.bf16.gmra.mxu1 %v1991_v19  ;;  %1091 = vperm.xlu2 %1718, %v35_v18  }
  0xc4   :  { %1606 = vmatmul.msk.bf16.gmra.mxu3 %vm243_vm0, %v1908_v55  ;;  %v340_v23 = vpop.f32.mrf.mxu2 }
  0xc6   :  { %v277_v25 = vpop.f32.mrf.mxu0 }
  0xc7   :  { %v509_v24 = vpop.f32.mrf.mxu3  ;;  %v306_v26 = vpop.f32.mrf.mxu1 }
  0xc8   :  { %v307_v27 = vadd.f32 %v306_v26, %v277_v25 }
  0xca   :  { %v2142_v28 = vadd.f32 %v335_v8, %v307_v27  ;;  %1096 = vperm.xlu2 %1718, %v36_v40  }
  0xcc   :  { %v528_v33 = vpop.f32.mrf.mxu2 }
  0xcd   :  { %v529_v34 = vadd.f32 %v528_v33, %v499_v60 }
  0xce   :  { %v280_v35 = vpop.f32.mrf.mxu0 }
  0xcf   :  { %v511_v32 = vpop.f32.mrf.mxu3  ;;  %v309_v36 = vpop.f32.mrf.mxu1 }
  0xd0   :  { %v310_v19 = vadd.f32 %v309_v36, %v280_v35 }
  0xd1   :  { %997 = vmatmul.bf16.gmra.mxu0 %v2024_v30 }
  0xd2   :  { %v2148_v55 = vadd.f32 %v338_v16, %v310_v19  ;;  %1026 = vmatmul.bf16.gmra.mxu1 %v2026_v31 }
  0xd4   :  { %1607 = vmatmul.msk.bf16.gmra.mxu3 %vm243_vm0, %v1964_v9  ;;  %v530_v38 = vpop.f32.mrf.mxu2 }
  0xd5   :  { %v531_v50 = vadd.f32 %v530_v38, %v2115_v45 }
  0xd6   :  { %v282_v39 = vpop.f32.mrf.mxu0 }
  0xd7   :  { %v514_v37 = vpop.f32.mrf.mxu3  ;;  %v311_v41 = vpop.f32.mrf.mxu1 }
  0xd8   :  { %v312_v42 = vadd.f32 %v311_v41, %v282_v39 }
  0xda   :  { %v2156_v44 = vadd.f32 %v340_v23, %v312_v42 }
  0xdc   :  { %v533_v46 = vpop.f32.mrf.mxu2 }
  0xdd   :  { %v534_v47 = vadd.f32 %v533_v46, %v504_v11 }
  0xde   :  { %v557_v48 = vpop.f32.mrf.mxu0 }
  0xdf   :  { %v516_v30 = vpop.f32.mrf.mxu3  ;;  %v558_v31 = vadd.f32 %v557_v48, %v529_v34  ;;  %v741_v49 = vpop.f32.mrf.mxu1 }
  0xe1   :  { %v577_v9 = vmax.f32 %v2103_v58, %v558_v31 }
  0xe4   :  { %v535_v51 = vpop.f32.mrf.mxu2 }
  0xe5   :  { %v536_v4 = vadd.f32 %v535_v51, %v506_v17 }
  0xe6   :  { %v559_v54 = vpop.f32.mrf.mxu0 }
  0xe7   :  { %v770_v52 = vpop.f32.mrf.mxu3  ;;  %v2160_v56 = vadd.f32 %v559_v54, %v531_v50  ;;  %v743_v57 = vpop.f32.mrf.mxu1 }
  0xe8   :  { %v771_v53 = vadd.f32 %v770_v52, %v741_v49 }
  0xe9   :  { %v578_v59 = vmax.f32 %v2111_v3, %v2160_v56 }
  0xec   :  { %v538_v60 = vpop.f32.mrf.mxu2 }
  0xed   :  { %v539_v62 = vadd.f32 %v538_v60, %v509_v24 }
  0xee   :  { %v562_v63 = vpop.f32.mrf.mxu0 }
  0xef   :  { %v772_v61 = vpop.f32.mrf.mxu3  ;;  %v563_v1 = vadd.f32 %v562_v63, %v534_v47  ;;  %v746_v43 = vpop.f32.mrf.mxu1 }
  0xf0   :  { %v773_v63 = vadd.f32 %v772_v61, %v743_v57 }
  0xf1   :  { %v579_v58 = vmax.f32 %v2121_v7, %v563_v1 }
  0xf4   :  { %v540_v45 = vpop.f32.mrf.mxu2 }
  0xf5   :  { %v541_v17 = vadd.f32 %v540_v45, %v511_v32 }
  0xf6   :  { %v564_v6 = vpop.f32.mrf.mxu0 }
  0xf7   :  { %v775_v10 = vpop.f32.mrf.mxu3  ;;  %v2165_v8 = vadd.f32 %v564_v6, %v536_v4  ;;  %v2167_v11 = vpop.f32.mrf.mxu1 }
  0xf8   :  { %v776_v5 = vadd.f32 %v775_v10, %v746_v43 }
  0xf9   :  { %v580_v12 = vmax.f32 %v2126_v15, %v2165_v8 }
  0xfc   :  { %v543_v13 = vpop.f32.mrf.mxu2 }
  0xfd   :  { %v544_v16 = vadd.f32 %v543_v13, %v514_v37 }
  0xfe   :  { %v567_v0 = vpop.f32.mrf.mxu0 }
  0xff   :  { %v2171_v14 = vpop.f32.mrf.mxu3  ;;  %v568_v2 = vadd.f32 %v567_v0, %v539_v62  ;;  %v751_v29 = vpop.f32.mrf.mxu1 }
 0x100   :  { %v778_v3 = vadd.f32 %v2171_v14, %v2167_v11 }
 0x101   :  { %v581_v7 = vmax.f32 %v2137_v22, %v568_v2 }
 0x104   :  { %v545_v20 = vpop.f32.mrf.mxu2 }
 0x105   :  { %v546_v37 = vadd.f32 %v545_v20, %v516_v30  ;;  %v1072_v30 = vpop.permute.xlu0 %1071 }
 0x106   :  { %v569_v24 = vpop.f32.mrf.mxu0 }
 0x107   :  { %v780_v21 = vpop.f32.mrf.mxu3  ;;  %v2174_v25 = vadd.f32 %v569_v24, %v541_v17  ;;  %v2176_v26 = vpop.f32.mrf.mxu1 }
 0x108   :  { %v781_v23 = vadd.f32 %v780_v21, %v751_v29 }
 0x109   :  { %v582_v27 = vmax.f32 %v2142_v28, %v2174_v25 }
 0x10c   :  { %v799_v34 = vpop.f32.mrf.mxu2 }
 0x10d   :  { %v800_v35 = vadd.f32 %v799_v34, %v771_v53  ;;  %v1077_v2 = vpop.permute.xlu0 %1076  ;;  %v1082_v34 = vpop.permute.xlu1 %1081 }
 0x10e   :  { %v572_v18 = vpop.f32.mrf.mxu0 }
 0x10f   :  { %v2180_v33 = vpop.f32.mrf.mxu3  ;;  %v2182_v36 = vadd.f32 %v572_v18, %v544_v16  ;;  %v756_v22 = vpop.f32.mrf.mxu1  ;;  %v819_v32 = vmax.f32 %v577_v9, %v800_v35 }
 0x111   :  { %v583_v19 = vmax.f32 %v2148_v55, %v2182_v36 }
 0x114   :  { %v801_v39 = vpop.f32.mrf.mxu2 }
 0x115   :  { %v802_v43 = vadd.f32 %v801_v39, %v773_v63 }
 0x116   :  { %v574_v41 = vpop.f32.mrf.mxu0 }
 0x117   :  { %v785_v38 = vpop.f32.mrf.mxu3  ;;  %v2186_v42 = vadd.f32 %v574_v41, %v546_v37  ;;  %v2188_v46 = vpop.f32.mrf.mxu1 }
 0x118   :  { %v786_v40 = vadd.f32 %v785_v38, %v756_v22 }
 0x119   :  { %v584_v47 = vmax.f32 %v2156_v44, %v2186_v42 }
 0x11c   :  { %v804_v31 = vpop.f32.mrf.mxu2 }
 0x11d   :  { %v805_v49 = vadd.f32 %v804_v31, %v776_v5  ;;  %v820_v5 = vmax.f32 %v578_v59, %v802_v43 }
 0x11e   :  { %v983_v9 = vpop.f32.mrf.mxu0 }
 0x11f   :  { %v2192_v48 = vpop.f32.mrf.mxu3  ;;  %v1012_v50 = vpop.f32.mrf.mxu1  ;;  %v821_v51 = vmax.f32 %v579_v58, %v805_v49 }
 0x120   :  { %v1013_v52 = vadd.f32 %v1012_v50, %v983_v9 }
 0x124   :  { %v806_v53 = vpop.f32.mrf.mxu2 }
 0x125   :  { %v807_v59 = vadd.f32 %v806_v53, %v778_v3 }
 0x126   :  { %v985_v60 = vpop.f32.mrf.mxu0 }
 0x127   :  { %v1041_v54 = vpop.f32.mrf.mxu3  ;;  %v1014_v62 = vpop.f32.mrf.mxu1  ;;  %v822_v41 = vmax.f32 %v580_v12, %v807_v59  ;;  %v783_v12 = vadd.f32 %v2180_v33, %v2176_v26 }
 0x128   :  { %v1042_v1 = vadd.f32 %v1041_v54, %v1013_v52  ;;  %v1015_v4 = vadd.f32 %v1014_v62, %v985_v60  ;;  %v1087_v52 = vpop.permute.xlu1 %1086  ;;  %v1092_v62 = vpop.permute.xlu2 %1091 }
 0x12a   :  { %v1061_v45 = vmax.f32 %v819_v32, %v1042_v1 }
 0x12c   :  { %v809_v10 = vpop.f32.mrf.mxu2  ;;  %v1109_v29 = vadd.f32 %v1072_v30, %v1061_v45 }
 0x12d   :  { %v810_v13 = vadd.f32 %v809_v10, %v781_v23 }
 0x12e   :  { %v988_v58 = vpop.f32.mrf.mxu0  ;;  %v1117_v57 = vmax.f32 %v1109_v29, 0.0 }
 0x12f   :  { %v1043_v6 = vpop.f32.mrf.mxu3  ;;  %v1017_v0 = vpop.f32.mrf.mxu1  ;;  %v823_v17 = vmax.f32 %v581_v7, %v810_v13 }
 0x130   :  { %v1044_v16 = vadd.f32 %v1043_v6, %v1015_v4  ;;  %v1018_v61 = vadd.f32 %v1017_v0, %v988_v58  ;;  %v1097_v10 = vpop.permute.xlu2 %1096 }
 0x132   :  { %v1062_v20 = vmax.f32 %v820_v5, %v1044_v16 }
 0x134   :  { %v1110_v21 = vadd.f32 %v1077_v2, %v1062_v20  ;;  %v811_v35 = vpop.f32.mrf.mxu2 }
 0x135   :  { %v812_v55 = vadd.f32 %v811_v35, %v783_v12 }
 0x136   :  { %v1118_v24 = vmax.f32 %v1110_v21, 0.0  ;;  %v990_v32 = vpop.f32.mrf.mxu0 }
 0x137   :  { %v1046_v18 = vpop.f32.mrf.mxu3  ;;  %v1019_v37 = vpop.f32.mrf.mxu1  ;;  %v824_v4 = vmax.f32 %v582_v27, %v812_v55 }
 0x138   :  { %v1695_v22 = vpack.c.bf16 %v1118_v24, %v1117_v57  ;;  %v1047_v56 = vadd.f32 %v1046_v18, %v1018_v61  ;;  %v1020_v7 = vadd.f32 %v1019_v37, %v990_v32  ;;  %v1102_v18 = vpop.permute.xlu0 %1101 }
 0x13a   :  { %1696 = vst [vmem:[%s2230_s3] sm:$0xff] %v1695_v22   ;;  %v1063_v23 = vmax.f32 %v821_v51, %v1047_v56 }
 0x13c   :  { %v814_v38 = vpop.f32.mrf.mxu2  ;;  %v1111_v11 = vadd.f32 %v1082_v34, %v1063_v23 }
 0x13d   :  { %v815_v31 = vadd.f32 %v814_v38, %v786_v40 }
 0x13e   :  { %v993_v9 = vpop.f32.mrf.mxu0  ;;  %v1119_v54 = vmax.f32 %v1111_v11, 0.0 }
 0x13f   :  { %v1048_v39 = vpop.f32.mrf.mxu3  ;;  %v1022_v50 = vpop.f32.mrf.mxu1  ;;  %v825_v14 = vmax.f32 %v583_v19, %v815_v31 }
 0x140   :  { %v1049_v49 = vadd.f32 %v1048_v39, %v1020_v7  ;;  %v1023_v51 = vadd.f32 %v1022_v50, %v993_v9 }
 0x142   :  { %v1064_v30 = vmax.f32 %v822_v41, %v1049_v49 }
 0x144   :  { %v1112_v53 = vadd.f32 %v1087_v52, %v1064_v30  ;;  %v816_v20 = vpop.f32.mrf.mxu2 }
 0x146   :  { %v1120_v60 = vmax.f32 %v1112_v53, 0.0  ;;  %v995_v15 = vpop.f32.mrf.mxu0 }
 0x147   :  { %v1051_v63 = vpop.f32.mrf.mxu3  ;;  %v1024_v8 = vpop.f32.mrf.mxu1 }
 0x148   :  { %v1700_v1 = vpack.c.bf16 %v1120_v60, %v1119_v54  ;;  %v1052_v40 = vadd.f32 %v1051_v63, %v1023_v51  ;;  %v1025_v36 = vadd.f32 %v1024_v8, %v995_v15 }
 0x14a   :  { %1712 = vst [vmem:[%s2230_s3 + $0x8] sm:$0xff] %v1700_v1   ;;  %v1065_v19 = vmax.f32 %v823_v17, %v1052_v40  ;;  %v788_v17 = vadd.f32 %v2192_v48, %v2188_v46  ;;  %v1107_v46 = vpop.permute.xlu1 %1106 }
 0x14c   :  { %v1113_v13 = vadd.f32 %v1092_v62, %v1065_v19  ;;  %v817_v21 = vadd.f32 %v816_v20, %v788_v17 }
 0x14e   :  { %v998_v6 = vpop.f32.mrf.mxu0  ;;  %v1121_v33 = vmax.f32 %v1113_v13, 0.0  ;;  %v826_v34 = vmax.f32 %v584_v47, %v817_v21 }
 0x14f   :  { %v1053_v43 = vpop.f32.mrf.mxu3  ;;  %v1027_v5 = vpop.f32.mrf.mxu1 }
 0x150   :  { %v1054_v45 = vadd.f32 %v1053_v43, %v1025_v36  ;;  %v1028_v58 = vadd.f32 %v1027_v5, %v998_v6 }
 0x152   :  { %v1066_v16 = vmax.f32 %v824_v4, %v1054_v45 }
 0x154   :  { %v1114_v26 = vadd.f32 %v1097_v10, %v1066_v16 }
 0x156   :  { %v1122_v0 = vmax.f32 %v1114_v26, 0.0  ;;  %v1000_v25 = vpop.f32.mrf.mxu0 }
 0x157   :  { %v1056_v2 = vpop.f32.mrf.mxu3  ;;  %v1029_v27 = vpop.f32.mrf.mxu1 }
 0x158   :  { %v1705_v29 = vpack.c.bf16 %v1122_v0, %v1121_v33  ;;  %v1057_v28 = vadd.f32 %v1056_v2, %v1028_v58  ;;  %v1030_v61 = vadd.f32 %v1029_v27, %v1000_v25 }
 0x15a   :  { %1713 = vst [vmem:[%s2230_s3 + $0x10] sm:$0xff] %v1705_v29   ;;  %v1067_v57 = vmax.f32 %v825_v14, %v1057_v28 }
 0x15c   :  { %v1115_v22 = vadd.f32 %v1102_v18, %v1067_v57 }
 0x15e   :  { %v1123_v37 = vmax.f32 %v1115_v22, 0.0 }
 0x15f   :  { %v1058_v24 = vpop.f32.mrf.mxu3 }
 0x160   :  { %v1059_v35 = vadd.f32 %v1058_v24, %v1030_v61 }
 0x162   :  { %v1068_v32 = vmax.f32 %v826_v34, %v1059_v35 }
 0x164   :  { %v1116_v48 = vadd.f32 %v1107_v46, %v1068_v32 }
 0x166   :  { %v1124_v3 = vmax.f32 %v1116_v48, 0.0 }
 0x168   :  { %v1710_v56 = vpack.c.bf16 %v1124_v3, %v1123_v37 }
 0x16a   :  { %1714 = vst [vmem:[%s2230_s3 + $0x18] sm:$0xff] %v1710_v56  }

// kernel: dropout_cnn_forward.5
= control target key start
LH: loop header
LB: loop body
LE: loop exit
PB: predicated region body
PF: predicated region fallthrough
CT: control target
= control target key end

     0   :  { %s1743_s1 = inlined_call_operand.vmem [shape: bf16[1024,128], index: 1, kind: input, shape index: {}]   ;;  %s1744_s0 = inlined_call_operand.vmem [shape: bf16[32,1024], index: 0, kind: input, shape index: {}]   ;;  %s1745_s2 = inlined_call_operand.vmem [shape: f32[1,128], index: 2, kind: input, shape index: {}]   ;;  %s1746_s4 = inlined_call_operand.vmem [shape: f32[1,128], index: 4, kind: input, shape index: {}]   ;;  %s1747_s3 = inlined_call_operand.vmem [shape: bf16[128,128], index: 3, kind: input, shape index: {}]   ;;  %s1748_s5 = inlined_call_operand.vmem [shape: s8[32,128], index: 5, kind: input, shape index: {}]   ;;  %s1749_s6 = inlined_call_operand.vmem [shape: s8[32,128], index: 6, kind: input, shape index: {}]   ;;  %s1750_s7 = inlined_call_operand.vmem [shape: f32[32,128], index: 7, kind: output, shape index: {}]  }
   0x1   :  { %v1292_v0 = vld [vmem:[%s1743_s1 + $0x38] sm:$0xff]  ;;  %v1291_v4 = vld [vmem:[%s1743_s1 + $0x30] sm:$0xff]  ;;  %v1290_v8 = vld [vmem:[%s1743_s1 + $0x28] sm:$0xff] }
   0x2   :  { %v1300_v1 = vld [vmem:[%s1743_s1 + $0x78] sm:$0xff]  ;;  %638 = vmatpush.bf16.msra.mxu0 %v1292_v0  ;;  %v1299_v5 = vld [vmem:[%s1743_s1 + $0x70] sm:$0xff]  ;;  %v1298_v9 = vld [vmem:[%s1743_s1 + $0x68] sm:$0xff] }
   0x3   :  { %v1308_v2 = vld [vmem:[%s1743_s1 + $0xb8] sm:$0xff]  ;;  %657 = vmatpush.bf16.msra.mxu1 %v1300_v1  ;;  %v1307_v6 = vld [vmem:[%s1743_s1 + $0xb0] sm:$0xff]  ;;  %v1306_v10 = vld [vmem:[%s1743_s1 + $0xa8] sm:$0xff] }
   0x4   :  { %v1316_v3 = vld [vmem:[%s1743_s1 + $0xf8] sm:$0xff]  ;;  %676 = vmatpush.bf16.msra.mxu2 %v1308_v2  ;;  %v1315_v7 = vld [vmem:[%s1743_s1 + $0xf0] sm:$0xff]  ;;  %v1314_v11 = vld [vmem:[%s1743_s1 + $0xe8] sm:$0xff] }
   0x5   :  { %695 = vmatpush.bf16.msra.mxu3 %v1316_v3  ;;  %v1289_v12 = vld [vmem:[%s1743_s1 + $0x20] sm:$0xff]  ;;  %v1288_v16 = vld [vmem:[%s1743_s1 + $0x18] sm:$0xff]  ;;  %v1287_v20 = vld [vmem:[%s1743_s1 + $0x10] sm:$0xff] }
   0x6   :  { %639 = vmatpush.bf16.msra.mxu0 %v1291_v4  ;;  %v1297_v13 = vld [vmem:[%s1743_s1 + $0x60] sm:$0xff]  ;;  %v1296_v17 = vld [vmem:[%s1743_s1 + $0x58] sm:$0xff]  ;;  %v1295_v21 = vld [vmem:[%s1743_s1 + $0x50] sm:$0xff] }
   0x7   :  { %658 = vmatpush.bf16.msra.mxu1 %v1299_v5  ;;  %v1305_v14 = vld [vmem:[%s1743_s1 + $0xa0] sm:$0xff]  ;;  %v1304_v18 = vld [vmem:[%s1743_s1 + $0x98] sm:$0xff]  ;;  %v1303_v22 = vld [vmem:[%s1743_s1 + $0x90] sm:$0xff] }
   0x8   :  { %677 = vmatpush.bf16.msra.mxu2 %v1307_v6  ;;  %v1313_v15 = vld [vmem:[%s1743_s1 + $0xe0] sm:$0xff]  ;;  %v1312_v19 = vld [vmem:[%s1743_s1 + $0xd8] sm:$0xff]  ;;  %v1311_v23 = vld [vmem:[%s1743_s1 + $0xd0] sm:$0xff] }
   0x9   :  { %696 = vmatpush.bf16.msra.mxu3 %v1315_v7  ;;  %v1286_v24 = vld [vmem:[%s1743_s1 + $0x8] sm:$0xff]  ;;  %v1285_v28 = vld [vmem:[%s1743_s1] sm:$0xff]  ;;  %v1340_v40 = vld [vmem:[%s1743_s1 + $0x1b8] sm:$0xff] }
   0xa   :  { %640 = vmatpush.bf16.msra.mxu0 %v1290_v8  ;;  %v1294_v25 = vld [vmem:[%s1743_s1 + $0x48] sm:$0xff]  ;;  %v1293_v29 = vld [vmem:[%s1743_s1 + $0x40] sm:$0xff]  ;;  %v1324_v41 = vld [vmem:[%s1743_s1 + $0x138] sm:$0xff] }
   0xb   :  { %659 = vmatpush.bf16.msra.mxu1 %v1298_v9  ;;  %v1302_v26 = vld [vmem:[%s1743_s1 + $0x88] sm:$0xff]  ;;  %v1301_v30 = vld [vmem:[%s1743_s1 + $0x80] sm:$0xff]  ;;  %v1332_v46 = vld [vmem:[%s1743_s1 + $0x178] sm:$0xff] }
   0xc   :  { %678 = vmatpush.bf16.msra.mxu2 %v1306_v10  ;;  %v1310_v27 = vld [vmem:[%s1743_s1 + $0xc8] sm:$0xff]  ;;  %v1309_v31 = vld [vmem:[%s1743_s1 + $0xc0] sm:$0xff]  ;;  %v1348_v47 = vld [vmem:[%s1743_s1 + $0x1f8] sm:$0xff] }
   0xd   :  { %697 = vmatpush.bf16.msra.mxu3 %v1314_v11  ;;  %v919_v32 = vld [vmem:[%s1744_s0] sm:$0xf]  ;;  %v1269_v34 = vld [vmem:[%s1744_s0 + $0x4] sm:$0xf]  ;;  %v927_v36 = vld [vmem:[%s1744_s0 + $0x8] sm:$0xf] }
   0xe   :  { %641 = vmatpush.bf16.msra.mxu0 %v1289_v12  ;;  %v1273_v33 = vld [vmem:[%s1744_s0 + $0x1c] sm:$0xf0]  ;;  %v921_v35 = vld [vmem:[%s1744_s0 + $0x20] sm:$0xf0]  ;;  %v1274_v37 = vld [vmem:[%s1744_s0 + $0x24] sm:$0xf0] }
   0xf   :  { %660 = vmatpush.bf16.msra.mxu1 %v1297_v13  ;;  %v1270_v38 = vld [vmem:[%s1744_s0 + $0xc] sm:$0xf]  ;;  %v920_v42 = vor.u32 %v1273_v33, %v919_v32  ;;  %v924_v43 = vor.u32 %v1269_v34, %v921_v35  ;;  %v928_v44 = vor.u32 %v1274_v37, %v927_v36  ;;  %v1339_v48 = vld [vmem:[%s1743_s1 + $0x1b0] sm:$0xff]  ;;  %v1337_v56 = vld [vmem:[%s1743_s1 + $0x1a0] sm:$0xff] }
  0x10   :  { %679 = vmatpush.bf16.msra.mxu2 %v1305_v14  ;;  %v929_v39 = vld [vmem:[%s1744_s0 + $0x28] sm:$0xf0]  ;;  %v1323_v49 = vld [vmem:[%s1743_s1 + $0x130] sm:$0xff]  ;;  %v1321_v57 = vld [vmem:[%s1743_s1 + $0x120] sm:$0xff] }
  0x11   :  { %698 = vmatpush.bf16.msra.mxu3 %v1313_v15  ;;  %v932_v45 = vor.u32 %v1270_v38, %v929_v39  ;;  %v1331_v50 = vld [vmem:[%s1743_s1 + $0x170] sm:$0xff]  ;;  %v1338_v52 = vld [vmem:[%s1743_s1 + $0x1a8] sm:$0xff]  ;;  %v1329_v58 = vld [vmem:[%s1743_s1 + $0x160] sm:$0xff] }
  0x12   :  { %642 = vmatpush.bf16.msra.mxu0 %v1288_v16  ;;  %v1347_v51 = vld [vmem:[%s1743_s1 + $0x1f0] sm:$0xff]  ;;  %v1322_v53 = vld [vmem:[%s1743_s1 + $0x128] sm:$0xff]  ;;  %v1345_v59 = vld [vmem:[%s1743_s1 + $0x1e0] sm:$0xff] }
  0x13   :  { %661 = vmatpush.bf16.msra.mxu1 %v1296_v17  ;;  %v1330_v54 = vld [vmem:[%s1743_s1 + $0x168] sm:$0xff]  ;;  %v951_v60 = vld [vmem:[%s1744_s0 + $0x40] sm:$0xf]  ;;  %v1277_v62 = vld [vmem:[%s1744_s0 + $0x44] sm:$0xf] }
  0x14   :  { %680 = vmatpush.bf16.msra.mxu2 %v1304_v18  ;;  %v1346_v55 = vld [vmem:[%s1743_s1 + $0x1e8] sm:$0xff]  ;;  %v1281_v61 = vld [vmem:[%s1744_s0 + $0x5c] sm:$0xf0]  ;;  %v953_v63 = vld [vmem:[%s1744_s0 + $0x60] sm:$0xf0] }
  0x15   :  { %699 = vmatpush.bf16.msra.mxu3 %v1312_v19  ;;  %v959_v0 = vld [vmem:[%s1744_s0 + $0x48] sm:$0xf]  ;;  %v1278_v2 = vld [vmem:[%s1744_s0 + $0x4c] sm:$0xf]  ;;  %v1336_v4 = vld [vmem:[%s1743_s1 + $0x198] sm:$0xff]  ;;  %v952_v6 = vor.u32 %v1281_v61, %v951_v60  ;;  %v956_v7 = vor.u32 %v1277_v62, %v953_v63 }
  0x16   :  { %643 = vmatpush.bf16.msra.mxu0 %v1287_v20  ;;  %v1282_v1 = vld [vmem:[%s1744_s0 + $0x64] sm:$0xf0]  ;;  %v961_v3 = vld [vmem:[%s1744_s0 + $0x68] sm:$0xf0]  ;;  %v1320_v5 = vld [vmem:[%s1743_s1 + $0x118] sm:$0xff] }
  0x17   :  { %662 = vmatpush.bf16.msra.mxu1 %v1295_v21  ;;  %v960_v8 = vor.u32 %v1282_v1, %v959_v0  ;;  %v964_v9 = vor.u32 %v1278_v2, %v961_v3  ;;  %v1328_v10 = vld [vmem:[%s1743_s1 + $0x158] sm:$0xff]  ;;  %v1335_v12 = vld [vmem:[%s1743_s1 + $0x190] sm:$0xff]  ;;  %v1334_v16 = vld [vmem:[%s1743_s1 + $0x188] sm:$0xff] }
  0x18   :  { %681 = vmatpush.bf16.msra.mxu2 %v1303_v22  ;;  %v1344_v11 = vld [vmem:[%s1743_s1 + $0x1d8] sm:$0xff]  ;;  %v1319_v13 = vld [vmem:[%s1743_s1 + $0x110] sm:$0xff]  ;;  %v1318_v17 = vld [vmem:[%s1743_s1 + $0x108] sm:$0xff] }
  0x19   :  { %700 = vmatpush.bf16.msra.mxu3 %v1311_v23  ;;  %v1327_v14 = vld [vmem:[%s1743_s1 + $0x150] sm:$0xff]  ;;  %v1326_v18 = vld [vmem:[%s1743_s1 + $0x148] sm:$0xff]  ;;  %v1333_v20 = vld [vmem:[%s1743_s1 + $0x180] sm:$0xff] }
  0x1a   :  { %644 = vmatpush.bf16.msra.mxu0 %v1286_v24  ;;  %v1343_v15 = vld [vmem:[%s1743_s1 + $0x1d0] sm:$0xff]  ;;  %v1342_v19 = vld [vmem:[%s1743_s1 + $0x1c8] sm:$0xff]  ;;  %v1317_v21 = vld [vmem:[%s1743_s1 + $0x100] sm:$0xff] }
  0x1b   :  { %663 = vmatpush.bf16.msra.mxu1 %v1294_v25  ;;  %v1325_v22 = vld [vmem:[%s1743_s1 + $0x140] sm:$0xff]  ;;  %v935_v24 = vld [vmem:[%s1744_s0 + $0x10] sm:$0xf]  ;;  %v1279_v38 = vld [vmem:[%s1744_s0 + $0x54] sm:$0xf] }
  0x1c   :  { %682 = vmatpush.bf16.msra.mxu2 %v1302_v26  ;;  %v1341_v23 = vld [vmem:[%s1743_s1 + $0x1c0] sm:$0xff]  ;;  %v1275_v25 = vld [vmem:[%s1744_s0 + $0x2c] sm:$0xf0]  ;;  %v1271_v26 = vld [vmem:[%s1744_s0 + $0x14] sm:$0xf] }
  0x1d   :  { %701 = vmatpush.bf16.msra.mxu3 %v1310_v27  ;;  %v937_v27 = vld [vmem:[%s1744_s0 + $0x30] sm:$0xf0]  ;;  %v936_v32 = vor.u32 %v1275_v25, %v935_v24  ;;  %v967_v36 = vld [vmem:[%s1744_s0 + $0x50] sm:$0xf]  ;;  %v1365_v0 = vld [vmem:[%s1745_s2] ss:$0 sm:$0xff] }
  0x1e   :  { %645 = vmatpush.bf16.msra.mxu0 %v1285_v28  ;;  %v943_v28 = vld [vmem:[%s1744_s0 + $0x18] sm:$0xf]  ;;  %v940_v33 = vor.u32 %v1271_v26, %v937_v27  ;;  %v1283_v37 = vld [vmem:[%s1744_s0 + $0x6c] sm:$0xf0]  ;;  %v969_v39 = vld [vmem:[%s1744_s0 + $0x70] sm:$0xf0] }
  0x1f   :  { %664 = vmatpush.bf16.msra.mxu1 %v1293_v29  ;;  %v1276_v29 = vld [vmem:[%s1744_s0 + $0x34] sm:$0xf0]  ;;  %v1350_v1 = vld [vmem:[%s1747_s3 + $0x8] sm:$0xff]  ;;  %v1349_v3 = vld [vmem:[%s1747_s3] sm:$0xff] }
  0x20   :  { %683 = vmatpush.bf16.msra.mxu2 %v1301_v30  ;;  %v1272_v30 = vld [vmem:[%s1744_s0 + $0x1c] sm:$0xf]  ;;  %v944_v34 = vor.u32 %v1276_v29, %v943_v28  ;;  %v794_v28 = vld [vmem:[%s1748_s5] sm:$0xff] }
  0x21   :  { %702 = vmatpush.bf16.msra.mxu3 %v1309_v31  ;;  %646 = vmatmul.bf16.vlgmr.msra.gmra.mxu0 %v920_v42  ;;  %v945_v31 = vld [vmem:[%s1744_s0 + $0x38] sm:$0xf0] }
  0x22   :  { %714 = vmatpush.bf16.msrb.mxu0 %v1324_v41  ;;  %665 = vmatmul.bf16.vlgmr.msra.gmra.mxu1 %v924_v43  ;;  %v948_v35 = vor.u32 %v1272_v30, %v945_v31  ;;  %v1284_v41 = vld [vmem:[%s1744_s0 + $0x74] sm:$0xf0]  ;;  %v1280_v42 = vld [vmem:[%s1744_s0 + $0x5c] sm:$0xf]  ;;  %v795_v30 = vunpack.c.0.s8 %v794_v28  ;;  %v796_v31 = vunpack.c.1.s8 %v794_v28 }
  0x23   :  { %684 = vmatmul.bf16.vlgmr.msra.gmra.mxu2 %v928_v44  ;;  %733 = vmatpush.bf16.msrb.mxu1 %v1332_v46  ;;  %v977_v43 = vld [vmem:[%s1744_s0 + $0x78] sm:$0xf0]  ;;  %v968_v44 = vor.u32 %v1283_v37, %v967_v36 }
  0x24   :  { %752 = vmatpush.bf16.msrb.mxu2 %v1340_v40  ;;  %703 = vmatmul.bf16.vlgmr.msra.gmra.mxu3 %v932_v45  ;;  %v975_v40 = vld [vmem:[%s1744_s0 + $0x58] sm:$0xf]  ;;  %v972_v45 = vor.u32 %v1279_v38, %v969_v39 }
  0x25   :  { %771 = vmatpush.bf16.msrb.mxu3 %v1348_v47  ;;  %v976_v46 = vor.u32 %v1284_v41, %v975_v40  ;;  %v980_v47 = vor.u32 %v1280_v42, %v977_v43  ;;  %v799_v40 = vcvt.s32.f32 %v795_v30  ;;  %v800_v41 = vcvt.s32.f32 %v796_v31 }
  0x26   :  { %715 = vmatpush.bf16.msrb.mxu0 %v1323_v49  ;;  %v1355_v49 = vld [vmem:[%s1747_s3 + $0x30] sm:$0xff] }
  0x27   :  { %734 = vmatpush.bf16.msrb.mxu1 %v1331_v50 }
  0x28   :  { %753 = vmatpush.bf16.msrb.mxu2 %v1339_v48  ;;  %v1356_v48 = vld [vmem:[%s1747_s3 + $0x38] sm:$0xff] }
  0x29   :  { %772 = vmatpush.bf16.msrb.mxu3 %v1347_v51 }
  0x2a   :  { %716 = vmatpush.bf16.msrb.mxu0 %v1322_v53  ;;  %v1353_v53 = vld [vmem:[%s1747_s3 + $0x20] sm:$0xff] }
  0x2b   :  { %735 = vmatpush.bf16.msrb.mxu1 %v1330_v54 }
  0x2c   :  { %754 = vmatpush.bf16.msrb.mxu2 %v1338_v52  ;;  %v1354_v52 = vld [vmem:[%s1747_s3 + $0x28] sm:$0xff] }
  0x2d   :  { %773 = vmatpush.bf16.msrb.mxu3 %v1346_v55 }
  0x2e   :  { %717 = vmatpush.bf16.msrb.mxu0 %v1321_v57 }
  0x2f   :  { %736 = vmatpush.bf16.msrb.mxu1 %v1329_v58  ;;  %v1352_v58 = vld [vmem:[%s1747_s3 + $0x18] sm:$0xff] }
  0x30   :  { %755 = vmatpush.bf16.msrb.mxu2 %v1337_v56 }
  0x31   :  { %774 = vmatpush.bf16.msrb.mxu3 %v1345_v59  ;;  %651 = vmatmul.bf16.gmra.mxu0 %v952_v6  ;;  %v1351_v59 = vld [vmem:[%s1747_s3 + $0x10] sm:$0xff] }
  0x32   :  { %718 = vmatpush.bf16.msrb.mxu0 %v1320_v5  ;;  %670 = vmatmul.bf16.gmra.mxu1 %v956_v7 }
  0x33   :  { %689 = vmatmul.bf16.gmra.mxu2 %v960_v8  ;;  %737 = vmatpush.bf16.msrb.mxu1 %v1328_v10 }
  0x34   :  { %756 = vmatpush.bf16.msrb.mxu2 %v1336_v4  ;;  %708 = vmatmul.bf16.gmra.mxu3 %v964_v9 }
  0x35   :  { %775 = vmatpush.bf16.msrb.mxu3 %v1344_v11 }
  0x36   :  { %719 = vmatpush.bf16.msrb.mxu0 %v1319_v13 }
  0x37   :  { %738 = vmatpush.bf16.msrb.mxu1 %v1327_v14 }
  0x38   :  { %757 = vmatpush.bf16.msrb.mxu2 %v1335_v12 }
  0x39   :  { %776 = vmatpush.bf16.msrb.mxu3 %v1343_v15 }
  0x3a   :  { %720 = vmatpush.bf16.msrb.mxu0 %v1318_v17 }
  0x3b   :  { %739 = vmatpush.bf16.msrb.mxu1 %v1326_v18 }
  0x3c   :  { %758 = vmatpush.bf16.msrb.mxu2 %v1334_v16 }
  0x3d   :  { %777 = vmatpush.bf16.msrb.mxu3 %v1342_v19 }
  0x3e   :  { %721 = vmatpush.bf16.msrb.mxu0 %v1317_v21 }
  0x3f   :  { %740 = vmatpush.bf16.msrb.mxu1 %v1325_v22 }
  0x40   :  { %759 = vmatpush.bf16.msrb.mxu2 %v1333_v20 }
  0x41   :  { %778 = vmatpush.bf16.msrb.mxu3 %v1341_v23  ;;  %722 = vmatmul.bf16.vlgmr.msrb.gmra.mxu0 %v936_v32 }
  0x42   :  { %741 = vmatmul.bf16.vlgmr.msrb.gmra.mxu1 %v940_v33  ;;  %877 = vmatpush.bf16.msra.mxu0 %v1356_v48 }
  0x43   :  { %760 = vmatmul.bf16.vlgmr.msrb.gmra.mxu2 %v944_v34  ;;  %1357 = vmatpush.bf16.msra.mxu1 %v1356_v48 }
  0x44   :  { %779 = vmatmul.bf16.vlgmr.msrb.gmra.mxu3 %v948_v35 }
  0x46   :  { %878 = vmatpush.bf16.msra.mxu0 %v1355_v49 }
  0x47   :  { %1358 = vmatpush.bf16.msra.mxu1 %v1355_v49 }
  0x4a   :  { %879 = vmatpush.bf16.msra.mxu0 %v1354_v52 }
  0x4b   :  { %1359 = vmatpush.bf16.msra.mxu1 %v1354_v52 }
  0x4e   :  { %880 = vmatpush.bf16.msra.mxu0 %v1353_v53 }
  0x4f   :  { %1360 = vmatpush.bf16.msra.mxu1 %v1353_v53 }
  0x51   :  { %727 = vmatmul.bf16.gmra.mxu0 %v968_v44 }
  0x52   :  { %746 = vmatmul.bf16.gmra.mxu1 %v972_v45  ;;  %881 = vmatpush.bf16.msra.mxu0 %v1352_v58 }
  0x53   :  { %765 = vmatmul.bf16.gmra.mxu2 %v976_v46  ;;  %1361 = vmatpush.bf16.msra.mxu1 %v1352_v58 }
  0x54   :  { %784 = vmatmul.bf16.gmra.mxu3 %v980_v47 }
  0x56   :  { %882 = vmatpush.bf16.msra.mxu0 %v1351_v59 }
  0x57   :  { %1362 = vmatpush.bf16.msra.mxu1 %v1351_v59 }
  0x5a   :  { %883 = vmatpush.bf16.msra.mxu0 %v1350_v1 }
  0x5b   :  { %1363 = vmatpush.bf16.msra.mxu1 %v1350_v1 }
  0x5e   :  { %884 = vmatpush.bf16.msra.mxu0 %v1349_v3 }
  0x5f   :  { %1364 = vmatpush.bf16.msra.mxu1 %v1349_v3 }
  0x9e   :  { %v647_v50 = vpop.f32.mrf.mxu0 }
  0x9f   :  { %v666_v51 = vpop.f32.mrf.mxu1  ;;  %v648_v2 = vadd.f32 %v1365_v0, %v647_v50 }
  0xa1   :  { %v667_v8 = vadd.f32 %v666_v51, %v648_v2 }
  0xa6   :  { %v685_v54 = vpop.f32.mrf.mxu2  ;;  %v649_v56 = vpop.f32.mrf.mxu0 }
  0xa7   :  { %v704_v55 = vpop.f32.mrf.mxu3  ;;  %v668_v57 = vpop.f32.mrf.mxu1  ;;  %v686_v9 = vadd.f32 %v685_v54, %v667_v8  ;;  %v650_v10 = vadd.f32 %v1365_v0, %v649_v56 }
  0xa9   :  { %v705_v15 = vadd.f32 %v704_v55, %v686_v9  ;;  %v669_v16 = vadd.f32 %v668_v57, %v650_v10 }
  0xae   :  { %v687_v60 = vpop.f32.mrf.mxu2  ;;  %v652_v62 = vpop.f32.mrf.mxu0 }
  0xaf   :  { %v706_v61 = vpop.f32.mrf.mxu3  ;;  %v671_v63 = vpop.f32.mrf.mxu1  ;;  %v688_v17 = vadd.f32 %v687_v60, %v669_v16  ;;  %v653_v19 = vadd.f32 %v1365_v0, %v652_v62  ;;  %v797_v62 = vunpack.c.2.s8 %v794_v28 }
  0xb1   :  { %v707_v21 = vadd.f32 %v706_v61, %v688_v17  ;;  %v672_v26 = vadd.f32 %v671_v63, %v653_v19 }
  0xb6   :  { %v690_v4 = vpop.f32.mrf.mxu2  ;;  %v654_v6 = vpop.f32.mrf.mxu0 }
  0xb7   :  { %v709_v5 = vpop.f32.mrf.mxu3  ;;  %v673_v7 = vpop.f32.mrf.mxu1  ;;  %v691_v32 = vadd.f32 %v690_v4, %v672_v26  ;;  %v655_v33 = vadd.f32 %v1365_v0, %v654_v6  ;;  %v798_v0 = vunpack.c.3.s8 %v794_v28 }
  0xb9   :  { %v710_v42 = vadd.f32 %v709_v5, %v691_v32  ;;  %v674_v43 = vadd.f32 %v673_v7, %v655_v33  ;;  %v801_v5 = vcvt.s32.f32 %v797_v62  ;;  %v802_v7 = vcvt.s32.f32 %v798_v0 }
  0xbe   :  { %v692_v11 = vpop.f32.mrf.mxu2  ;;  %v723_v13 = vpop.f32.mrf.mxu0 }
  0xbf   :  { %v711_v12 = vpop.f32.mrf.mxu3  ;;  %v742_v14 = vpop.f32.mrf.mxu1  ;;  %v724_v18 = vadd.f32 %v723_v13, %v705_v15  ;;  %v693_v47 = vadd.f32 %v692_v11, %v674_v43 }
  0xc1   :  { %v743_v22 = vadd.f32 %v742_v14, %v724_v18  ;;  %v712_v53 = vadd.f32 %v711_v12, %v693_v47  ;;  %v896_v12 = vld [vmem:[%s1749_s6] sm:$0xff] }
  0xc2   :  { %v897_v13 = vunpack.c.0.s8 %v896_v12  ;;  %v1366_v14 = vld [vmem:[%s1746_s4] ss:$0 sm:$0xff]  ;;  %v898_v19 = vunpack.c.1.s8 %v896_v12 }
  0xc4   :  { %v901_v15 = vcvt.s32.f32 %v897_v13 }
  0xc6   :  { %v761_v20 = vpop.f32.mrf.mxu2  ;;  %v725_v24 = vpop.f32.mrf.mxu0 }
  0xc7   :  { %v780_v23 = vpop.f32.mrf.mxu3  ;;  %v744_v25 = vpop.f32.mrf.mxu1  ;;  %v762_v27 = vadd.f32 %v761_v20, %v743_v22  ;;  %v726_v29 = vadd.f32 %v725_v24, %v707_v21  ;;  %v902_v20 = vcvt.s32.f32 %v898_v19  ;;  %v899_v24 = vunpack.c.2.s8 %v896_v12 }
  0xc9   :  { %v781_v34 = vadd.f32 %v780_v23, %v762_v27  ;;  %v745_v35 = vadd.f32 %v744_v25, %v726_v29  ;;  %v903_v25 = vcvt.s32.f32 %v899_v24  ;;  %v900_v29 = vunpack.c.3.s8 %v896_v12 }
  0xcb   :  { %v790_v44 = vmax.f32 %v781_v34, 0.0  ;;  %v904_v30 = vcvt.s32.f32 %v900_v29 }
  0xcd   :  { %v803_v50 = vmul.f32 %v799_v40, %v790_v44 }
  0xce   :  { %v763_v36 = vpop.f32.mrf.mxu2  ;;  %v728_v39 = vpop.f32.mrf.mxu0 }
  0xcf   :  { %v764_v37 = vadd.f32 %v763_v36, %v745_v35  ;;  %v782_v38 = vpop.f32.mrf.mxu3  ;;  %v747_v46 = vpop.f32.mrf.mxu1  ;;  %v729_v49 = vadd.f32 %v728_v39, %v710_v42 }
  0xd1   :  { %v783_v45 = vadd.f32 %v782_v38, %v764_v37  ;;  %v748_v55 = vadd.f32 %v747_v46, %v729_v49 }
  0xd3   :  { %v791_v48 = vmax.f32 %v783_v45, 0.0 }
  0xd5   :  { %v804_v51 = vmul.f32 %v800_v41, %v791_v48 }
  0xd6   :  { %v766_v52 = vpop.f32.mrf.mxu2  ;;  %v730_v57 = vpop.f32.mrf.mxu0 }
  0xd7   :  { %v807_v54 = vpack.c.bf16 %v804_v51, %v803_v50  ;;  %v785_v56 = vpop.f32.mrf.mxu3  ;;  %v767_v58 = vadd.f32 %v766_v52, %v748_v55  ;;  %v731_v59 = vadd.f32 %v730_v57, %v712_v53  ;;  %v749_v60 = vpop.f32.mrf.mxu1 }
  0xd9   :  { %885 = vmatmul.bf16.vlgmr.msra.gmra.mxu0 %v807_v54  ;;  %v786_v61 = vadd.f32 %v785_v56, %v767_v58  ;;  %v750_v63 = vadd.f32 %v749_v60, %v731_v59 }
  0xdb   :  { %v792_v4 = vmax.f32 %v786_v61, 0.0 }
  0xdd   :  { %v805_v9 = vmul.f32 %v801_v5, %v792_v4 }
  0xde   :  { %v768_v1 = vpop.f32.mrf.mxu2 }
  0xdf   :  { %v769_v2 = vadd.f32 %v768_v1, %v750_v63  ;;  %v787_v3 = vpop.f32.mrf.mxu3 }
  0xe1   :  { %v788_v6 = vadd.f32 %v787_v3, %v769_v2 }
  0xe3   :  { %v793_v8 = vmax.f32 %v788_v6, 0.0 }
  0xe5   :  { %v806_v10 = vmul.f32 %v802_v7, %v793_v8 }
  0xe7   :  { %v808_v11 = vpack.c.bf16 %v806_v10, %v805_v9 }
  0xe9   :  { %890 = vmatmul.bf16.vlgmr.msra.gmra.mxu1 %v808_v11 }
 0x156   :  { %v886_v16 = vpop.f32.mrf.mxu0 }
 0x157   :  { %v887_v17 = vadd.f32 %v1366_v14, %v886_v16 }
 0x159   :  { %v905_v18 = vmul.f32 %v901_v15, %v887_v17 }
 0x15b   :  { %909 = vst [vmem:[%s1750_s7] sm:$0xff] %v905_v18 }
 0x15e   :  { %v888_v21 = vpop.f32.mrf.mxu0 }
 0x15f   :  { %v889_v22 = vadd.f32 %v1366_v14, %v888_v21 }
 0x161   :  { %v906_v23 = vmul.f32 %v902_v20, %v889_v22 }
 0x163   :  { %910 = vst [vmem:[%s1750_s7 + $0x8] sm:$0xff] %v906_v23 }
 0x166   :  { %v891_v26 = vpop.f32.mrf.mxu1 }
 0x167   :  { %v892_v27 = vadd.f32 %v1366_v14, %v891_v26 }
 0x169   :  { %v907_v28 = vmul.f32 %v903_v25, %v892_v27 }
 0x16b   :  { %911 = vst [vmem:[%s1750_s7 + $0x10] sm:$0xff] %v907_v28 }
 0x16e   :  { %v893_v31 = vpop.f32.mrf.mxu1 }
 0x16f   :  { %v894_v32 = vadd.f32 %v1366_v14, %v893_v31 }
 0x171   :  { %v908_v33 = vmul.f32 %v904_v30, %v894_v32 }
 0x173   :  { %912 = vst [vmem:[%s1750_s7 + $0x18] sm:$0xff] %v908_v33 }

</bundles_post_ra>
